<compile_context>
chip_gen: v7x
topology: tpu7x:2x2x1
jax: 0.10.0
libtpu: 0.0.40
codegen_flags: <defaults>
</compile_context>

<pallas_src>
import functools
import math

import jax
import jax.numpy as jnp
from jax.experimental import pallas as pl
from jax.experimental.pallas import tpu as pltpu

# ---- small synthetic config (consistent with the module's constructor semantics) ----
IMG = 16           # img_size
PATCH = 4          # patch_size
CHANNELS = 3       # ViT always uses 3 input channels
EMBED = 32         # embed_dim (hidden_size)
DEPTH = 2          # number of transformer layers
HEADS = 4          # num_attention_heads
HEAD_DIM = EMBED // HEADS
NUM_CLASSES = 8    # num_classes
LN_EPS = 1e-12     # HF ViTConfig default layer_norm_eps

N_PATCHES = (IMG // PATCH) ** 2
SEQ = N_PATCHES + 1
PATCH_K = CHANNELS * PATCH * PATCH
LANE = 128         # blob lane width


# --------------------------- kernel helpers ---------------------------

def _layernorm(x, gamma, beta):
    mu = jnp.mean(x, axis=-1, keepdims=True)
    var = jnp.mean((x - mu) ** 2, axis=-1, keepdims=True)
    return (x - mu) * jax.lax.rsqrt(var + LN_EPS) * gamma + beta


# --------------------------- fused forward kernel ---------------------------

def fused_vit_kernel(patches_ref, wblob_ref, bblob_ref, o_ref, *,
                     depth, num_heads, head_dim, embed, seq, num_classes,
                     patch_k, woff, boff):
    """Whole ViTPerception forward for one batch element, all in VMEM."""
    d = embed
    scale = 1.0 / math.sqrt(head_dim)
    f32 = jnp.float32
    bf16 = jnp.bfloat16

    def wmat(name, rows, cols):          # bf16 MXU operand slab
        return wblob_ref[pl.ds(woff[name], rows), pl.ds(0, cols)]

    def bvec(name, cols, rows=1):        # f32 bias / LN / token-base row(s)
        return bblob_ref[pl.ds(boff[name], rows), pl.ds(0, cols)]

    # ---- patch embedding; CLS token, position embedding and patch bias are folded
    #      into token_base (row 0 of patches is zeros => pure CLS + pos there).
    p = patches_ref[0].astype(bf16)                                        # (S, K)
    x = (jnp.dot(p, wmat('w_patch', patch_k, d), preferred_element_type=f32)
         + bvec('token_base', d, rows=seq))                                # (S, D) f32

    for l in range(depth):  # layers unrolled; everything stays VMEM-resident
        # ---- attention block: LN -> single (D,3D) QKV matmul -> per-head SDPA ->
        #      single (D,D) output projection -> residual
        h16 = _layernorm(x, bvec(f'ln1_g_{l}', d), bvec(f'ln1_b_{l}', d)).astype(bf16)
        qkv = (jnp.dot(h16, wmat(f'wqkv_{l}', d, 3 * d), preferred_element_type=f32)
               + bvec(f'bqkv_{l}', 3 * d))                                 # (S, 3D) f32

        ctx_heads = []
        for h in range(num_heads):       # per-head attention (head_dim=8 is inherent)
            lo = h * head_dim
            qh = qkv[:, lo:lo + head_dim].astype(bf16)                     # (S, hd)
            kh = qkv[:, d + lo:d + lo + head_dim].astype(bf16)
            vh = qkv[:, 2 * d + lo:2 * d + lo + head_dim].astype(bf16)
            s = jnp.einsum('qc,kc->qk', qh, kh,
                           preferred_element_type=f32) * scale             # (S, S)
            # hand-rolled softmax: divide goes to the EUP via approx reciprocal
            m = jnp.max(s, axis=-1, keepdims=True)
            e = jnp.exp(s - m)
            inv = pl.reciprocal(jnp.sum(e, axis=-1, keepdims=True), approx=True)
            pr = (e * inv).astype(bf16)
            ctx_heads.append(jnp.dot(pr, vh, preferred_element_type=f32))  # (S, hd)

        ctx = jnp.concatenate(ctx_heads, axis=-1).astype(bf16)             # (S, D)
        x = x + (jnp.dot(ctx, wmat(f'wo_{l}', d, d), preferred_element_type=f32)
                 + bvec(f'bo_{l}', d))                                     # residual

        # ---- MLP block (layernorm_after -> intermediate GELU -> output -> residual)
        h2 = _layernorm(x, bvec(f'ln2_g_{l}', d), bvec(f'ln2_b_{l}', d)).astype(bf16)
        mlp = (jnp.dot(h2, wmat(f'wi_{l}', d, 4 * d), preferred_element_type=f32)
               + bvec(f'bi_{l}', 4 * d))
        # TODO(synk): HF ViT uses exact (erf) GELU; tanh approximation used for robust TPU lowering.
        mlp = jax.nn.gelu(mlp, approximate=True).astype(bf16)
        x = x + (jnp.dot(mlp, wmat(f'w2_{l}', 4 * d, d), preferred_element_type=f32)
                 + bvec(f'b2_{l}', d))

    # ---- final ViTModel LayerNorm on CLS token + classifier linear ----
    cls = x[0:1, :]                                                        # (1, D)
    nrm = _layernorm(cls, bvec('lnf_g', d), bvec('lnf_b', d)).astype(bf16)
    o_ref[0] = (jnp.dot(nrm, wmat('w_cls', d, num_classes),
                        preferred_element_type=f32)
                + bvec('b_cls', num_classes))                              # (1, C)


# --------------------------- wrapper / glue (plain JAX) ---------------------------

def extract_patches(x, p):
    """NCHW image -> (B, num_patches, C*p*p), flattened in (c, i, j) order to
    match Conv2d(kernel=p, stride=p) weight layout."""
    B, C, H, W = x.shape
    gh, gw = H // p, W // p
    x = x.reshape(B, C, gh, p, gw, p)
    x = x.transpose(0, 2, 4, 1, 3, 5)          # (B, gh, gw, C, p, p)
    return x.reshape(B, gh * gw, C * p * p)


def make_forward(woff, boff):
    """Bind static blob offsets into the kernel and return a jitted forward fn."""
    kern = functools.partial(
        fused_vit_kernel, depth=DEPTH, num_heads=HEADS, head_dim=HEAD_DIM,
        embed=EMBED, seq=SEQ, num_classes=NUM_CLASSES, patch_k=PATCH_K,
        woff=woff, boff=boff)

    @jax.jit
    def forward(x, wblob, bblob):
        """Equivalent of ViTPerception.forward: (B, 3, H, W) -> (B, num_classes)."""
        B = x.shape[0]
        patches = extract_patches(x, PATCH)                    # (B, N, K)
        aug = jnp.pad(patches, ((0, 0), (1, 0), (0, 0)))       # zero CLS row -> (B, S, K)
        # grid=(B,) parallel: each v7x TensorCore takes one image. On single-TC
        # v5e/v6e the batch could instead be folded into one grid step.
        out = pl.pallas_call(
            kern,
            grid=(B,),
            in_specs=[pl.BlockSpec((1, SEQ, PATCH_K), lambda b: (b, 0, 0)),
                      pl.BlockSpec(wblob.shape, lambda b: (0, 0)),
                      pl.BlockSpec(bblob.shape, lambda b: (0, 0))],
            out_specs=pl.BlockSpec((1, 1, NUM_CLASSES), lambda b: (b, 0, 0)),
            out_shape=jax.ShapeDtypeStruct((B, 1, NUM_CLASSES), jnp.float32),
            compiler_params=pltpu.CompilerParams(dimension_semantics=("parallel",)),
        )(aug, wblob, bblob)
        return out[:, 0, :]                                    # (B, num_classes)

    return forward


# --------------------------- parameter init + packing ---------------------------

def init_params(key):
    D = EMBED
    K = PATCH_K
    keys = iter(jax.random.split(key, 8 + DEPTH * 8))

    def nrm(k, shape, scale=0.02):
        return scale * jax.random.normal(k, shape, jnp.float32)

    params = {
        'w_patch': nrm(next(keys), (K, D)),                    # patch-embed conv as matmul
        'b_patch': jnp.zeros((1, D), jnp.float32),
        'cls_token': nrm(next(keys), (1, 1, D)),
        'pos_emb': nrm(next(keys), (1, SEQ, D)),
        'ln_f_g': jnp.ones((1, D), jnp.float32),               # ViTModel final layernorm
        'ln_f_b': jnp.zeros((1, D), jnp.float32),
        'w_cls': nrm(next(keys), (D, NUM_CLASSES)),            # classifier head
        'b_cls': jnp.zeros((1, NUM_CLASSES), jnp.float32),
        'layers': [],
    }
    for _ in range(DEPTH):
        params['layers'].append({
            'ln1_g': jnp.ones((1, D), jnp.float32),
            'ln1_b': jnp.zeros((1, D), jnp.float32),
            'wq': nrm(next(keys), (D, D)), 'bq': jnp.zeros((1, D), jnp.float32),
            'wk': nrm(next(keys), (D, D)), 'bk': jnp.zeros((1, D), jnp.float32),
            'wv': nrm(next(keys), (D, D)), 'bv': jnp.zeros((1, D), jnp.float32),
            'wo': nrm(next(keys), (D, D)), 'bo': jnp.zeros((1, D), jnp.float32),
            'ln2_g': jnp.ones((1, D), jnp.float32),
            'ln2_b': jnp.zeros((1, D), jnp.float32),
            'wi': nrm(next(keys), (D, 4 * D)), 'bi': jnp.zeros((1, 4 * D), jnp.float32),
            'w2': nrm(next(keys), (4 * D, D)), 'b2': jnp.zeros((1, D), jnp.float32),
        })
    return params


def _pack_blob(entries, dtype):
    """Pack a list of (name, 2-D array) into one (R, 128) blob.
    Every entry is lane-padded to 128 and row-padded to a multiple of 8 so each
    slab starts on a sublane-tile boundary. Returns (blob, {name: row_offset})."""
    slabs, offsets, cur = [], {}, 0
    for name, a in entries:
        a = jnp.asarray(a, dtype)
        r, c = a.shape
        r_pad = -(-r // 8) * 8
        slabs.append(jnp.pad(a, ((0, r_pad - r), (0, LANE - c))))
        offsets[name] = cur
        cur += r_pad
    return jnp.concatenate(slabs, axis=0), offsets


def pack_params(params):
    """Repack weights lane-dense and fuse them into two flat blobs:
       * wblob (bf16): all MXU operands (patch embed, QKV as (D,3D), Wo, Wi, W2, cls)
       * bblob (f32):  token_base (cls+pos+patch-bias folded), all biases and LN params
    Returns the blobs plus static row-offset tables for in-kernel slicing."""
    D, L = EMBED, DEPTH

    # ---- bf16 weight blob ----
    w_entries = [('w_patch', params['w_patch'])]
    for l, lp in enumerate(params['layers']):
        wqkv = jnp.concatenate([lp['wq'], lp['wk'], lp['wv']], axis=1)   # (D, 3D)
        w_entries += [(f'wqkv_{l}', wqkv), (f'wo_{l}', lp['wo']),
                      (f'wi_{l}', lp['wi']), (f'w2_{l}', lp['w2'])]
    w_entries.append(('w_cls', params['w_cls']))
    wblob, woff = _pack_blob(w_entries, jnp.bfloat16)

    # ---- f32 bias / LN / token-base blob ----
    token_base = params['pos_emb'][0] + jnp.concatenate(
        [params['cls_token'][0],
         jnp.broadcast_to(params['b_patch'], (N_PATCHES, D))], axis=0)   # (S, D)
    b_entries = [('token_base', token_base)]
    for l, lp in enumerate(params['layers']):
        bqkv = jnp.concatenate([lp['bq'], lp['bk'], lp['bv']], axis=1)   # (1, 3D)
        b_entries += [(f'ln1_g_{l}', lp['ln1_g']), (f'ln1_b_{l}', lp['ln1_b']),
                      (f'bqkv_{l}', bqkv), (f'bo_{l}', lp['bo']),
                      (f'ln2_g_{l}', lp['ln2_g']), (f'ln2_b_{l}', lp['ln2_b']),
                      (f'bi_{l}', lp['bi']), (f'b2_{l}', lp['b2'])]
    b_entries += [('lnf_g', params['ln_f_g']), ('lnf_b', params['ln_f_b']),
                  ('b_cls', params['b_cls'])]
    bblob, boff = _pack_blob(b_entries, jnp.float32)

    return dict(wblob=wblob, bblob=bblob, woff=woff, boff=boff)


if __name__ == "__main__":
    key = jax.random.PRNGKey(0)
    pkey, xkey = jax.random.split(key)
    params = init_params(pkey)
    packed = pack_params(params)
    forward = make_forward(packed['woff'], packed['boff'])

    x = jax.random.normal(xkey, (2, CHANNELS, IMG, IMG), jnp.float32)
    out = forward(x, packed['wblob'], packed['bblob'])
    jax.block_until_ready(out)
    assert out.shape == (2, NUM_CLASSES)
    assert bool(jnp.all(jnp.isfinite(out)))
    print("KERNEL_OK")
</pallas_src>

<mosaic_0001>
module attributes {stable_mosaic.version = 11 : i64} {
  func.func @fused_vit_kernel(%arg0: i32, %arg1: memref<1x17x48xf32, #tpu.memory_space<vmem>>, %arg2: memref<528x128xbf16, #tpu.memory_space<vmem>>, %arg3: memref<176x128xf32, #tpu.memory_space<vmem>>, %arg4: memref<1x1x8xf32, #tpu.memory_space<vmem>>) attributes {dimension_semantics = [#tpu.dimension_semantics<parallel>], iteration_bounds = array<i64: 2>, scalar_prefetch = 0 : i64, scratch_operands = 0 : i64, tpu.core_type = #tpu.core_type<tc>, window_params = [{transform_indices = @transform_0, window_bounds = array<i64: 1, 17, 48>}, {pipeline_mode = #tpu.pipeline_mode<synchronous>, transform_indices = @transform_1, window_bounds = array<i64: 528, 128>}, {pipeline_mode = #tpu.pipeline_mode<synchronous>, transform_indices = @transform_2, window_bounds = array<i64: 176, 128>}, {transform_indices = @transform_3, window_bounds = array<i64: 1, 1, 8>}]} {
    %c0 = arith.constant 0 : index
    %c0_0 = arith.constant 0 : index
    %c0_1 = arith.constant 0 : index
    %0 = vector.load %arg1[%c0, %c0_0, %c0_1] : memref<1x17x48xf32, #tpu.memory_space<vmem>>, vector<1x17x48xf32>
    %1 = vector.shape_cast %0 : vector<1x17x48xf32> to vector<17x48xf32>
    %2 = arith.truncf %1 : vector<17x48xf32> to vector<17x48xbf16>
    %c0_2 = arith.constant 0 : index
    %c0_3 = arith.constant 0 : index
    %3 = vector.load %arg2[%c0_2, %c0_3] : memref<528x128xbf16, #tpu.memory_space<vmem>>, vector<48x32xbf16>
    %cst = arith.constant dense<0.000000e+00> : vector<17x32xf32>
    %4 = tpu.matmul %2, %3, %cst {dimension_numbers = #tpu.dot_dimension_numbers<[1], [0], [0], [1], [0, 0, 1, 1], [], []>} : vector<17x48xbf16>, vector<48x32xbf16>, vector<17x32xf32> -> vector<17x32xf32>
    %c0_4 = arith.constant 0 : index
    %c0_5 = arith.constant 0 : index
    %5 = vector.load %arg3[%c0_4, %c0_5] : memref<176x128xf32, #tpu.memory_space<vmem>>, vector<17x32xf32>
    %6 = arith.addf %4, %5 : vector<17x32xf32>
    %c24 = arith.constant 24 : index
    %c0_6 = arith.constant 0 : index
    %7 = vector.load %arg3[%c24, %c0_6] : memref<176x128xf32, #tpu.memory_space<vmem>>, vector<1x32xf32>
    %c32 = arith.constant 32 : index
    %c0_7 = arith.constant 0 : index
    %8 = vector.load %arg3[%c32, %c0_7] : memref<176x128xf32, #tpu.memory_space<vmem>>, vector<1x32xf32>
    %cst_8 = arith.constant dense<0.000000e+00> : vector<17xf32>
    %9 = vector.multi_reduction <add>, %6, %cst_8 [1] : vector<17x32xf32> to vector<17xf32>
    %10 = vector.shape_cast %9 : vector<17xf32> to vector<17x1xf32>
    %cst_9 = arith.constant 3.200000e+01 : f32
    %11 = vector.broadcast %cst_9 : f32 to vector<17x1xf32>
    %12 = arith.divf %10, %11 : vector<17x1xf32>
    %13 = vector.broadcast %12 : vector<17x1xf32> to vector<17x32xf32>
    %14 = arith.subf %6, %13 : vector<17x32xf32>
    %15 = arith.mulf %14, %14 : vector<17x32xf32>
    %cst_10 = arith.constant dense<0.000000e+00> : vector<17xf32>
    %16 = vector.multi_reduction <add>, %15, %cst_10 [1] : vector<17x32xf32> to vector<17xf32>
    %17 = vector.shape_cast %16 : vector<17xf32> to vector<17x1xf32>
    %cst_11 = arith.constant 3.200000e+01 : f32
    %18 = vector.broadcast %cst_11 : f32 to vector<17x1xf32>
    %19 = arith.divf %17, %18 : vector<17x1xf32>
    %20 = vector.broadcast %12 : vector<17x1xf32> to vector<17x32xf32>
    %21 = arith.subf %6, %20 : vector<17x32xf32>
    %cst_12 = arith.constant 9.99999996E-13 : f32
    %22 = vector.broadcast %cst_12 : f32 to vector<17x1xf32>
    %23 = arith.addf %19, %22 : vector<17x1xf32>
    %24 = math.rsqrt %23 : vector<17x1xf32>
    %25 = vector.broadcast %24 : vector<17x1xf32> to vector<17x32xf32>
    %26 = arith.mulf %21, %25 : vector<17x32xf32>
    %27 = vector.broadcast %7 : vector<1x32xf32> to vector<17x32xf32>
    %28 = arith.mulf %26, %27 : vector<17x32xf32>
    %29 = vector.broadcast %8 : vector<1x32xf32> to vector<17x32xf32>
    %30 = arith.addf %28, %29 : vector<17x32xf32>
    %31 = arith.truncf %30 : vector<17x32xf32> to vector<17x32xbf16>
    %c48 = arith.constant 48 : index
    %c0_13 = arith.constant 0 : index
    %32 = vector.load %arg2[%c48, %c0_13] : memref<528x128xbf16, #tpu.memory_space<vmem>>, vector<32x96xbf16>
    %cst_14 = arith.constant dense<0.000000e+00> : vector<17x96xf32>
    %33 = tpu.matmul %31, %32, %cst_14 {dimension_numbers = #tpu.dot_dimension_numbers<[1], [0], [0], [1], [0, 0, 1, 1], [], []>} : vector<17x32xbf16>, vector<32x96xbf16>, vector<17x96xf32> -> vector<17x96xf32>
    %c40 = arith.constant 40 : index
    %c0_15 = arith.constant 0 : index
    %34 = vector.load %arg3[%c40, %c0_15] : memref<176x128xf32, #tpu.memory_space<vmem>>, vector<1x96xf32>
    %35 = vector.broadcast %34 : vector<1x96xf32> to vector<17x96xf32>
    %36 = arith.addf %33, %35 : vector<17x96xf32>
    %37 = vector.extract_strided_slice %36 {offsets = [0, 0], sizes = [17, 8], strides = [1, 1]} : vector<17x96xf32> to vector<17x8xf32>
    %38 = arith.truncf %37 : vector<17x8xf32> to vector<17x8xbf16>
    %39 = vector.extract_strided_slice %36 {offsets = [0, 32], sizes = [17, 8], strides = [1, 1]} : vector<17x96xf32> to vector<17x8xf32>
    %40 = arith.truncf %39 : vector<17x8xf32> to vector<17x8xbf16>
    %41 = vector.extract_strided_slice %36 {offsets = [0, 64], sizes = [17, 8], strides = [1, 1]} : vector<17x96xf32> to vector<17x8xf32>
    %42 = arith.truncf %41 : vector<17x8xf32> to vector<17x8xbf16>
    "tpu.trace_start"() <{level = 10 : i32, message = "qc,kc->qk"}> : () -> ()
    %cst_16 = arith.constant dense<0.000000e+00> : vector<17x17xf32>
    %43 = tpu.matmul %38, %40, %cst_16 {dimension_numbers = #tpu.dot_dimension_numbers<[1], [1], [0], [0], [0, 0, 1, 0], [], []>} : vector<17x8xbf16>, vector<17x8xbf16>, vector<17x17xf32> -> vector<17x17xf32>
    "tpu.trace_stop"() : () -> ()
    %cst_17 = arith.constant 0.353553385 : f32
    %44 = vector.broadcast %cst_17 : f32 to vector<17x17xf32>
    %45 = arith.mulf %43, %44 : vector<17x17xf32>
    %cst_18 = arith.constant dense<0xFF800000> : vector<17xf32>
    %46 = vector.multi_reduction <maximumf>, %45, %cst_18 [1] : vector<17x17xf32> to vector<17xf32>
    %47 = vector.shape_cast %46 : vector<17xf32> to vector<17x1xf32>
    %48 = vector.broadcast %47 : vector<17x1xf32> to vector<17x17xf32>
    %49 = arith.subf %45, %48 : vector<17x17xf32>
    %50 = math.exp %49 : vector<17x17xf32>
    %cst_19 = arith.constant dense<0.000000e+00> : vector<17xf32>
    %51 = vector.multi_reduction <add>, %50, %cst_19 [1] : vector<17x17xf32> to vector<17xf32>
    %52 = vector.shape_cast %51 : vector<17xf32> to vector<17x1xf32>
    %53 = tpu.reciprocal %52 {approx = true} : vector<17x1xf32> -> vector<17x1xf32>
    %54 = vector.broadcast %53 : vector<17x1xf32> to vector<17x17xf32>
    %55 = arith.mulf %50, %54 : vector<17x17xf32>
    %56 = arith.truncf %55 : vector<17x17xf32> to vector<17x17xbf16>
    %cst_20 = arith.constant dense<0.000000e+00> : vector<17x8xf32>
    %57 = tpu.matmul %56, %42, %cst_20 {dimension_numbers = #tpu.dot_dimension_numbers<[1], [0], [0], [1], [0, 0, 1, 1], [], []>} : vector<17x17xbf16>, vector<17x8xbf16>, vector<17x8xf32> -> vector<17x8xf32>
    %58 = vector.extract_strided_slice %36 {offsets = [0, 8], sizes = [17, 8], strides = [1, 1]} : vector<17x96xf32> to vector<17x8xf32>
    %59 = arith.truncf %58 : vector<17x8xf32> to vector<17x8xbf16>
    %60 = vector.extract_strided_slice %36 {offsets = [0, 40], sizes = [17, 8], strides = [1, 1]} : vector<17x96xf32> to vector<17x8xf32>
    %61 = arith.truncf %60 : vector<17x8xf32> to vector<17x8xbf16>
    %62 = vector.extract_strided_slice %36 {offsets = [0, 72], sizes = [17, 8], strides = [1, 1]} : vector<17x96xf32> to vector<17x8xf32>
    %63 = arith.truncf %62 : vector<17x8xf32> to vector<17x8xbf16>
    "tpu.trace_start"() <{level = 10 : i32, message = "qc,kc->qk"}> : () -> ()
    %cst_21 = arith.constant dense<0.000000e+00> : vector<17x17xf32>
    %64 = tpu.matmul %59, %61, %cst_21 {dimension_numbers = #tpu.dot_dimension_numbers<[1], [1], [0], [0], [0, 0, 1, 0], [], []>} : vector<17x8xbf16>, vector<17x8xbf16>, vector<17x17xf32> -> vector<17x17xf32>
    "tpu.trace_stop"() : () -> ()
    %cst_22 = arith.constant 0.353553385 : f32
    %65 = vector.broadcast %cst_22 : f32 to vector<17x17xf32>
    %66 = arith.mulf %64, %65 : vector<17x17xf32>
    %cst_23 = arith.constant dense<0xFF800000> : vector<17xf32>
    %67 = vector.multi_reduction <maximumf>, %66, %cst_23 [1] : vector<17x17xf32> to vector<17xf32>
    %68 = vector.shape_cast %67 : vector<17xf32> to vector<17x1xf32>
    %69 = vector.broadcast %68 : vector<17x1xf32> to vector<17x17xf32>
    %70 = arith.subf %66, %69 : vector<17x17xf32>
    %71 = math.exp %70 : vector<17x17xf32>
    %cst_24 = arith.constant dense<0.000000e+00> : vector<17xf32>
    %72 = vector.multi_reduction <add>, %71, %cst_24 [1] : vector<17x17xf32> to vector<17xf32>
    %73 = vector.shape_cast %72 : vector<17xf32> to vector<17x1xf32>
    %74 = tpu.reciprocal %73 {approx = true} : vector<17x1xf32> -> vector<17x1xf32>
    %75 = vector.broadcast %74 : vector<17x1xf32> to vector<17x17xf32>
    %76 = arith.mulf %71, %75 : vector<17x17xf32>
    %77 = arith.truncf %76 : vector<17x17xf32> to vector<17x17xbf16>
    %cst_25 = arith.constant dense<0.000000e+00> : vector<17x8xf32>
    %78 = tpu.matmul %77, %63, %cst_25 {dimension_numbers = #tpu.dot_dimension_numbers<[1], [0], [0], [1], [0, 0, 1, 1], [], []>} : vector<17x17xbf16>, vector<17x8xbf16>, vector<17x8xf32> -> vector<17x8xf32>
    %79 = vector.extract_strided_slice %36 {offsets = [0, 16], sizes = [17, 8], strides = [1, 1]} : vector<17x96xf32> to vector<17x8xf32>
    %80 = arith.truncf %79 : vector<17x8xf32> to vector<17x8xbf16>
    %81 = vector.extract_strided_slice %36 {offsets = [0, 48], sizes = [17, 8], strides = [1, 1]} : vector<17x96xf32> to vector<17x8xf32>
    %82 = arith.truncf %81 : vector<17x8xf32> to vector<17x8xbf16>
    %83 = vector.extract_strided_slice %36 {offsets = [0, 80], sizes = [17, 8], strides = [1, 1]} : vector<17x96xf32> to vector<17x8xf32>
    %84 = arith.truncf %83 : vector<17x8xf32> to vector<17x8xbf16>
    "tpu.trace_start"() <{level = 10 : i32, message = "qc,kc->qk"}> : () -> ()
    %cst_26 = arith.constant dense<0.000000e+00> : vector<17x17xf32>
    %85 = tpu.matmul %80, %82, %cst_26 {dimension_numbers = #tpu.dot_dimension_numbers<[1], [1], [0], [0], [0, 0, 1, 0], [], []>} : vector<17x8xbf16>, vector<17x8xbf16>, vector<17x17xf32> -> vector<17x17xf32>
    "tpu.trace_stop"() : () -> ()
    %cst_27 = arith.constant 0.353553385 : f32
    %86 = vector.broadcast %cst_27 : f32 to vector<17x17xf32>
    %87 = arith.mulf %85, %86 : vector<17x17xf32>
    %cst_28 = arith.constant dense<0xFF800000> : vector<17xf32>
    %88 = vector.multi_reduction <maximumf>, %87, %cst_28 [1] : vector<17x17xf32> to vector<17xf32>
    %89 = vector.shape_cast %88 : vector<17xf32> to vector<17x1xf32>
    %90 = vector.broadcast %89 : vector<17x1xf32> to vector<17x17xf32>
    %91 = arith.subf %87, %90 : vector<17x17xf32>
    %92 = math.exp %91 : vector<17x17xf32>
    %cst_29 = arith.constant dense<0.000000e+00> : vector<17xf32>
    %93 = vector.multi_reduction <add>, %92, %cst_29 [1] : vector<17x17xf32> to vector<17xf32>
    %94 = vector.shape_cast %93 : vector<17xf32> to vector<17x1xf32>
    %95 = tpu.reciprocal %94 {approx = true} : vector<17x1xf32> -> vector<17x1xf32>
    %96 = vector.broadcast %95 : vector<17x1xf32> to vector<17x17xf32>
    %97 = arith.mulf %92, %96 : vector<17x17xf32>
    %98 = arith.truncf %97 : vector<17x17xf32> to vector<17x17xbf16>
    %cst_30 = arith.constant dense<0.000000e+00> : vector<17x8xf32>
    %99 = tpu.matmul %98, %84, %cst_30 {dimension_numbers = #tpu.dot_dimension_numbers<[1], [0], [0], [1], [0, 0, 1, 1], [], []>} : vector<17x17xbf16>, vector<17x8xbf16>, vector<17x8xf32> -> vector<17x8xf32>
    %100 = vector.extract_strided_slice %36 {offsets = [0, 24], sizes = [17, 8], strides = [1, 1]} : vector<17x96xf32> to vector<17x8xf32>
    %101 = arith.truncf %100 : vector<17x8xf32> to vector<17x8xbf16>
    %102 = vector.extract_strided_slice %36 {offsets = [0, 56], sizes = [17, 8], strides = [1, 1]} : vector<17x96xf32> to vector<17x8xf32>
    %103 = arith.truncf %102 : vector<17x8xf32> to vector<17x8xbf16>
    %104 = vector.extract_strided_slice %36 {offsets = [0, 88], sizes = [17, 8], strides = [1, 1]} : vector<17x96xf32> to vector<17x8xf32>
    %105 = arith.truncf %104 : vector<17x8xf32> to vector<17x8xbf16>
    "tpu.trace_start"() <{level = 10 : i32, message = "qc,kc->qk"}> : () -> ()
    %cst_31 = arith.constant dense<0.000000e+00> : vector<17x17xf32>
    %106 = tpu.matmul %101, %103, %cst_31 {dimension_numbers = #tpu.dot_dimension_numbers<[1], [1], [0], [0], [0, 0, 1, 0], [], []>} : vector<17x8xbf16>, vector<17x8xbf16>, vector<17x17xf32> -> vector<17x17xf32>
    "tpu.trace_stop"() : () -> ()
    %cst_32 = arith.constant 0.353553385 : f32
    %107 = vector.broadcast %cst_32 : f32 to vector<17x17xf32>
    %108 = arith.mulf %106, %107 : vector<17x17xf32>
    %cst_33 = arith.constant dense<0xFF800000> : vector<17xf32>
    %109 = vector.multi_reduction <maximumf>, %108, %cst_33 [1] : vector<17x17xf32> to vector<17xf32>
    %110 = vector.shape_cast %109 : vector<17xf32> to vector<17x1xf32>
    %111 = vector.broadcast %110 : vector<17x1xf32> to vector<17x17xf32>
    %112 = arith.subf %108, %111 : vector<17x17xf32>
    %113 = math.exp %112 : vector<17x17xf32>
    %cst_34 = arith.constant dense<0.000000e+00> : vector<17xf32>
    %114 = vector.multi_reduction <add>, %113, %cst_34 [1] : vector<17x17xf32> to vector<17xf32>
    %115 = vector.shape_cast %114 : vector<17xf32> to vector<17x1xf32>
    %116 = tpu.reciprocal %115 {approx = true} : vector<17x1xf32> -> vector<17x1xf32>
    %117 = vector.broadcast %116 : vector<17x1xf32> to vector<17x17xf32>
    %118 = arith.mulf %113, %117 : vector<17x17xf32>
    %119 = arith.truncf %118 : vector<17x17xf32> to vector<17x17xbf16>
    %cst_35 = arith.constant dense<0.000000e+00> : vector<17x8xf32>
    %120 = tpu.matmul %119, %105, %cst_35 {dimension_numbers = #tpu.dot_dimension_numbers<[1], [0], [0], [1], [0, 0, 1, 1], [], []>} : vector<17x17xbf16>, vector<17x8xbf16>, vector<17x8xf32> -> vector<17x8xf32>
    %121 = tpu.concatenate %57, %78, %99, %120 in 1 : vector<17x8xf32>, vector<17x8xf32>, vector<17x8xf32>, vector<17x8xf32> -> vector<17x32xf32>
    %122 = arith.truncf %121 : vector<17x32xf32> to vector<17x32xbf16>
    %c80 = arith.constant 80 : index
    %c0_36 = arith.constant 0 : index
    %123 = vector.load %arg2[%c80, %c0_36] : memref<528x128xbf16, #tpu.memory_space<vmem>>, vector<32x32xbf16>
    %cst_37 = arith.constant dense<0.000000e+00> : vector<17x32xf32>
    %124 = tpu.matmul %122, %123, %cst_37 {dimension_numbers = #tpu.dot_dimension_numbers<[1], [0], [0], [1], [0, 0, 1, 1], [], []>} : vector<17x32xbf16>, vector<32x32xbf16>, vector<17x32xf32> -> vector<17x32xf32>
    %c48_38 = arith.constant 48 : index
    %c0_39 = arith.constant 0 : index
    %125 = vector.load %arg3[%c48_38, %c0_39] : memref<176x128xf32, #tpu.memory_space<vmem>>, vector<1x32xf32>
    %126 = vector.broadcast %125 : vector<1x32xf32> to vector<17x32xf32>
    %127 = arith.addf %124, %126 : vector<17x32xf32>
    %128 = arith.addf %6, %127 : vector<17x32xf32>
    %c56 = arith.constant 56 : index
    %c0_40 = arith.constant 0 : index
    %129 = vector.load %arg3[%c56, %c0_40] : memref<176x128xf32, #tpu.memory_space<vmem>>, vector<1x32xf32>
    %c64 = arith.constant 64 : index
    %c0_41 = arith.constant 0 : index
    %130 = vector.load %arg3[%c64, %c0_41] : memref<176x128xf32, #tpu.memory_space<vmem>>, vector<1x32xf32>
    %cst_42 = arith.constant dense<0.000000e+00> : vector<17xf32>
    %131 = vector.multi_reduction <add>, %128, %cst_42 [1] : vector<17x32xf32> to vector<17xf32>
    %132 = vector.shape_cast %131 : vector<17xf32> to vector<17x1xf32>
    %cst_43 = arith.constant 3.200000e+01 : f32
    %133 = vector.broadcast %cst_43 : f32 to vector<17x1xf32>
    %134 = arith.divf %132, %133 : vector<17x1xf32>
    %135 = vector.broadcast %134 : vector<17x1xf32> to vector<17x32xf32>
    %136 = arith.subf %128, %135 : vector<17x32xf32>
    %137 = arith.mulf %136, %136 : vector<17x32xf32>
    %cst_44 = arith.constant dense<0.000000e+00> : vector<17xf32>
    %138 = vector.multi_reduction <add>, %137, %cst_44 [1] : vector<17x32xf32> to vector<17xf32>
    %139 = vector.shape_cast %138 : vector<17xf32> to vector<17x1xf32>
    %cst_45 = arith.constant 3.200000e+01 : f32
    %140 = vector.broadcast %cst_45 : f32 to vector<17x1xf32>
    %141 = arith.divf %139, %140 : vector<17x1xf32>
    %142 = vector.broadcast %134 : vector<17x1xf32> to vector<17x32xf32>
    %143 = arith.subf %128, %142 : vector<17x32xf32>
    %cst_46 = arith.constant 9.99999996E-13 : f32
    %144 = vector.broadcast %cst_46 : f32 to vector<17x1xf32>
    %145 = arith.addf %141, %144 : vector<17x1xf32>
    %146 = math.rsqrt %145 : vector<17x1xf32>
    %147 = vector.broadcast %146 : vector<17x1xf32> to vector<17x32xf32>
    %148 = arith.mulf %143, %147 : vector<17x32xf32>
    %149 = vector.broadcast %129 : vector<1x32xf32> to vector<17x32xf32>
    %150 = arith.mulf %148, %149 : vector<17x32xf32>
    %151 = vector.broadcast %130 : vector<1x32xf32> to vector<17x32xf32>
    %152 = arith.addf %150, %151 : vector<17x32xf32>
    %153 = arith.truncf %152 : vector<17x32xf32> to vector<17x32xbf16>
    %c112 = arith.constant 112 : index
    %c0_47 = arith.constant 0 : index
    %154 = vector.load %arg2[%c112, %c0_47] : memref<528x128xbf16, #tpu.memory_space<vmem>>, vector<32x128xbf16>
    %cst_48 = arith.constant dense<0.000000e+00> : vector<17x128xf32>
    %155 = tpu.matmul %153, %154, %cst_48 {dimension_numbers = #tpu.dot_dimension_numbers<[1], [0], [0], [1], [0, 0, 1, 1], [], []>} : vector<17x32xbf16>, vector<32x128xbf16>, vector<17x128xf32> -> vector<17x128xf32>
    %c72 = arith.constant 72 : index
    %c0_49 = arith.constant 0 : index
    %156 = vector.load %arg3[%c72, %c0_49] : memref<176x128xf32, #tpu.memory_space<vmem>>, vector<1x128xf32>
    %157 = vector.broadcast %156 : vector<1x128xf32> to vector<17x128xf32>
    %158 = arith.addf %155, %157 : vector<17x128xf32>
    %159 = arith.mulf %158, %158 : vector<17x128xf32>
    %160 = arith.mulf %158, %159 : vector<17x128xf32>
    %cst_50 = arith.constant 4.471500e-02 : f32
    %161 = vector.broadcast %cst_50 : f32 to vector<17x128xf32>
    %162 = arith.mulf %161, %160 : vector<17x128xf32>
    %163 = arith.addf %158, %162 : vector<17x128xf32>
    %cst_51 = arith.constant 0.797884583 : f32
    %164 = vector.broadcast %cst_51 : f32 to vector<17x128xf32>
    %165 = arith.mulf %164, %163 : vector<17x128xf32>
    %166 = math.tanh %165 : vector<17x128xf32>
    %cst_52 = arith.constant 1.000000e+00 : f32
    %167 = vector.broadcast %cst_52 : f32 to vector<17x128xf32>
    %168 = arith.addf %167, %166 : vector<17x128xf32>
    %cst_53 = arith.constant 5.000000e-01 : f32
    %169 = vector.broadcast %cst_53 : f32 to vector<17x128xf32>
    %170 = arith.mulf %169, %168 : vector<17x128xf32>
    %171 = arith.mulf %158, %170 : vector<17x128xf32>
    %172 = arith.truncf %171 : vector<17x128xf32> to vector<17x128xbf16>
    %c144 = arith.constant 144 : index
    %c0_54 = arith.constant 0 : index
    %173 = vector.load %arg2[%c144, %c0_54] : memref<528x128xbf16, #tpu.memory_space<vmem>>, vector<128x32xbf16>
    %cst_55 = arith.constant dense<0.000000e+00> : vector<17x32xf32>
    %174 = tpu.matmul %172, %173, %cst_55 {dimension_numbers = #tpu.dot_dimension_numbers<[1], [0], [0], [1], [0, 0, 1, 1], [], []>} : vector<17x128xbf16>, vector<128x32xbf16>, vector<17x32xf32> -> vector<17x32xf32>
    %c80_56 = arith.constant 80 : index
    %c0_57 = arith.constant 0 : index
    %175 = vector.load %arg3[%c80_56, %c0_57] : memref<176x128xf32, #tpu.memory_space<vmem>>, vector<1x32xf32>
    %176 = vector.broadcast %175 : vector<1x32xf32> to vector<17x32xf32>
    %177 = arith.addf %174, %176 : vector<17x32xf32>
    %178 = arith.addf %128, %177 : vector<17x32xf32>
    %c88 = arith.constant 88 : index
    %c0_58 = arith.constant 0 : index
    %179 = vector.load %arg3[%c88, %c0_58] : memref<176x128xf32, #tpu.memory_space<vmem>>, vector<1x32xf32>
    %c96 = arith.constant 96 : index
    %c0_59 = arith.constant 0 : index
    %180 = vector.load %arg3[%c96, %c0_59] : memref<176x128xf32, #tpu.memory_space<vmem>>, vector<1x32xf32>
    %cst_60 = arith.constant dense<0.000000e+00> : vector<17xf32>
    %181 = vector.multi_reduction <add>, %178, %cst_60 [1] : vector<17x32xf32> to vector<17xf32>
    %182 = vector.shape_cast %181 : vector<17xf32> to vector<17x1xf32>
    %cst_61 = arith.constant 3.200000e+01 : f32
    %183 = vector.broadcast %cst_61 : f32 to vector<17x1xf32>
    %184 = arith.divf %182, %183 : vector<17x1xf32>
    %185 = vector.broadcast %184 : vector<17x1xf32> to vector<17x32xf32>
    %186 = arith.subf %178, %185 : vector<17x32xf32>
    %187 = arith.mulf %186, %186 : vector<17x32xf32>
    %cst_62 = arith.constant dense<0.000000e+00> : vector<17xf32>
    %188 = vector.multi_reduction <add>, %187, %cst_62 [1] : vector<17x32xf32> to vector<17xf32>
    %189 = vector.shape_cast %188 : vector<17xf32> to vector<17x1xf32>
    %cst_63 = arith.constant 3.200000e+01 : f32
    %190 = vector.broadcast %cst_63 : f32 to vector<17x1xf32>
    %191 = arith.divf %189, %190 : vector<17x1xf32>
    %192 = vector.broadcast %184 : vector<17x1xf32> to vector<17x32xf32>
    %193 = arith.subf %178, %192 : vector<17x32xf32>
    %cst_64 = arith.constant 9.99999996E-13 : f32
    %194 = vector.broadcast %cst_64 : f32 to vector<17x1xf32>
    %195 = arith.addf %191, %194 : vector<17x1xf32>
    %196 = math.rsqrt %195 : vector<17x1xf32>
    %197 = vector.broadcast %196 : vector<17x1xf32> to vector<17x32xf32>
    %198 = arith.mulf %193, %197 : vector<17x32xf32>
    %199 = vector.broadcast %179 : vector<1x32xf32> to vector<17x32xf32>
    %200 = arith.mulf %198, %199 : vector<17x32xf32>
    %201 = vector.broadcast %180 : vector<1x32xf32> to vector<17x32xf32>
    %202 = arith.addf %200, %201 : vector<17x32xf32>
    %203 = arith.truncf %202 : vector<17x32xf32> to vector<17x32xbf16>
    %c272 = arith.constant 272 : index
    %c0_65 = arith.constant 0 : index
    %204 = vector.load %arg2[%c272, %c0_65] : memref<528x128xbf16, #tpu.memory_space<vmem>>, vector<32x96xbf16>
    %cst_66 = arith.constant dense<0.000000e+00> : vector<17x96xf32>
    %205 = tpu.matmul %203, %204, %cst_66 {dimension_numbers = #tpu.dot_dimension_numbers<[1], [0], [0], [1], [0, 0, 1, 1], [], []>} : vector<17x32xbf16>, vector<32x96xbf16>, vector<17x96xf32> -> vector<17x96xf32>
    %c104 = arith.constant 104 : index
    %c0_67 = arith.constant 0 : index
    %206 = vector.load %arg3[%c104, %c0_67] : memref<176x128xf32, #tpu.memory_space<vmem>>, vector<1x96xf32>
    %207 = vector.broadcast %206 : vector<1x96xf32> to vector<17x96xf32>
    %208 = arith.addf %205, %207 : vector<17x96xf32>
    %209 = vector.extract_strided_slice %208 {offsets = [0, 0], sizes = [17, 8], strides = [1, 1]} : vector<17x96xf32> to vector<17x8xf32>
    %210 = arith.truncf %209 : vector<17x8xf32> to vector<17x8xbf16>
    %211 = vector.extract_strided_slice %208 {offsets = [0, 32], sizes = [17, 8], strides = [1, 1]} : vector<17x96xf32> to vector<17x8xf32>
    %212 = arith.truncf %211 : vector<17x8xf32> to vector<17x8xbf16>
    %213 = vector.extract_strided_slice %208 {offsets = [0, 64], sizes = [17, 8], strides = [1, 1]} : vector<17x96xf32> to vector<17x8xf32>
    %214 = arith.truncf %213 : vector<17x8xf32> to vector<17x8xbf16>
    "tpu.trace_start"() <{level = 10 : i32, message = "qc,kc->qk"}> : () -> ()
    %cst_68 = arith.constant dense<0.000000e+00> : vector<17x17xf32>
    %215 = tpu.matmul %210, %212, %cst_68 {dimension_numbers = #tpu.dot_dimension_numbers<[1], [1], [0], [0], [0, 0, 1, 0], [], []>} : vector<17x8xbf16>, vector<17x8xbf16>, vector<17x17xf32> -> vector<17x17xf32>
    "tpu.trace_stop"() : () -> ()
    %cst_69 = arith.constant 0.353553385 : f32
    %216 = vector.broadcast %cst_69 : f32 to vector<17x17xf32>
    %217 = arith.mulf %215, %216 : vector<17x17xf32>
    %cst_70 = arith.constant dense<0xFF800000> : vector<17xf32>
    %218 = vector.multi_reduction <maximumf>, %217, %cst_70 [1] : vector<17x17xf32> to vector<17xf32>
    %219 = vector.shape_cast %218 : vector<17xf32> to vector<17x1xf32>
    %220 = vector.broadcast %219 : vector<17x1xf32> to vector<17x17xf32>
    %221 = arith.subf %217, %220 : vector<17x17xf32>
    %222 = math.exp %221 : vector<17x17xf32>
    %cst_71 = arith.constant dense<0.000000e+00> : vector<17xf32>
    %223 = vector.multi_reduction <add>, %222, %cst_71 [1] : vector<17x17xf32> to vector<17xf32>
    %224 = vector.shape_cast %223 : vector<17xf32> to vector<17x1xf32>
    %225 = tpu.reciprocal %224 {approx = true} : vector<17x1xf32> -> vector<17x1xf32>
    %226 = vector.broadcast %225 : vector<17x1xf32> to vector<17x17xf32>
    %227 = arith.mulf %222, %226 : vector<17x17xf32>
    %228 = arith.truncf %227 : vector<17x17xf32> to vector<17x17xbf16>
    %cst_72 = arith.constant dense<0.000000e+00> : vector<17x8xf32>
    %229 = tpu.matmul %228, %214, %cst_72 {dimension_numbers = #tpu.dot_dimension_numbers<[1], [0], [0], [1], [0, 0, 1, 1], [], []>} : vector<17x17xbf16>, vector<17x8xbf16>, vector<17x8xf32> -> vector<17x8xf32>
    %230 = vector.extract_strided_slice %208 {offsets = [0, 8], sizes = [17, 8], strides = [1, 1]} : vector<17x96xf32> to vector<17x8xf32>
    %231 = arith.truncf %230 : vector<17x8xf32> to vector<17x8xbf16>
    %232 = vector.extract_strided_slice %208 {offsets = [0, 40], sizes = [17, 8], strides = [1, 1]} : vector<17x96xf32> to vector<17x8xf32>
    %233 = arith.truncf %232 : vector<17x8xf32> to vector<17x8xbf16>
    %234 = vector.extract_strided_slice %208 {offsets = [0, 72], sizes = [17, 8], strides = [1, 1]} : vector<17x96xf32> to vector<17x8xf32>
    %235 = arith.truncf %234 : vector<17x8xf32> to vector<17x8xbf16>
    "tpu.trace_start"() <{level = 10 : i32, message = "qc,kc->qk"}> : () -> ()
    %cst_73 = arith.constant dense<0.000000e+00> : vector<17x17xf32>
    %236 = tpu.matmul %231, %233, %cst_73 {dimension_numbers = #tpu.dot_dimension_numbers<[1], [1], [0], [0], [0, 0, 1, 0], [], []>} : vector<17x8xbf16>, vector<17x8xbf16>, vector<17x17xf32> -> vector<17x17xf32>
    "tpu.trace_stop"() : () -> ()
    %cst_74 = arith.constant 0.353553385 : f32
    %237 = vector.broadcast %cst_74 : f32 to vector<17x17xf32>
    %238 = arith.mulf %236, %237 : vector<17x17xf32>
    %cst_75 = arith.constant dense<0xFF800000> : vector<17xf32>
    %239 = vector.multi_reduction <maximumf>, %238, %cst_75 [1] : vector<17x17xf32> to vector<17xf32>
    %240 = vector.shape_cast %239 : vector<17xf32> to vector<17x1xf32>
    %241 = vector.broadcast %240 : vector<17x1xf32> to vector<17x17xf32>
    %242 = arith.subf %238, %241 : vector<17x17xf32>
    %243 = math.exp %242 : vector<17x17xf32>
    %cst_76 = arith.constant dense<0.000000e+00> : vector<17xf32>
    %244 = vector.multi_reduction <add>, %243, %cst_76 [1] : vector<17x17xf32> to vector<17xf32>
    %245 = vector.shape_cast %244 : vector<17xf32> to vector<17x1xf32>
    %246 = tpu.reciprocal %245 {approx = true} : vector<17x1xf32> -> vector<17x1xf32>
    %247 = vector.broadcast %246 : vector<17x1xf32> to vector<17x17xf32>
    %248 = arith.mulf %243, %247 : vector<17x17xf32>
    %249 = arith.truncf %248 : vector<17x17xf32> to vector<17x17xbf16>
    %cst_77 = arith.constant dense<0.000000e+00> : vector<17x8xf32>
    %250 = tpu.matmul %249, %235, %cst_77 {dimension_numbers = #tpu.dot_dimension_numbers<[1], [0], [0], [1], [0, 0, 1, 1], [], []>} : vector<17x17xbf16>, vector<17x8xbf16>, vector<17x8xf32> -> vector<17x8xf32>
    %251 = vector.extract_strided_slice %208 {offsets = [0, 16], sizes = [17, 8], strides = [1, 1]} : vector<17x96xf32> to vector<17x8xf32>
    %252 = arith.truncf %251 : vector<17x8xf32> to vector<17x8xbf16>
    %253 = vector.extract_strided_slice %208 {offsets = [0, 48], sizes = [17, 8], strides = [1, 1]} : vector<17x96xf32> to vector<17x8xf32>
    %254 = arith.truncf %253 : vector<17x8xf32> to vector<17x8xbf16>
    %255 = vector.extract_strided_slice %208 {offsets = [0, 80], sizes = [17, 8], strides = [1, 1]} : vector<17x96xf32> to vector<17x8xf32>
    %256 = arith.truncf %255 : vector<17x8xf32> to vector<17x8xbf16>
    "tpu.trace_start"() <{level = 10 : i32, message = "qc,kc->qk"}> : () -> ()
    %cst_78 = arith.constant dense<0.000000e+00> : vector<17x17xf32>
    %257 = tpu.matmul %252, %254, %cst_78 {dimension_numbers = #tpu.dot_dimension_numbers<[1], [1], [0], [0], [0, 0, 1, 0], [], []>} : vector<17x8xbf16>, vector<17x8xbf16>, vector<17x17xf32> -> vector<17x17xf32>
    "tpu.trace_stop"() : () -> ()
    %cst_79 = arith.constant 0.353553385 : f32
    %258 = vector.broadcast %cst_79 : f32 to vector<17x17xf32>
    %259 = arith.mulf %257, %258 : vector<17x17xf32>
    %cst_80 = arith.constant dense<0xFF800000> : vector<17xf32>
    %260 = vector.multi_reduction <maximumf>, %259, %cst_80 [1] : vector<17x17xf32> to vector<17xf32>
    %261 = vector.shape_cast %260 : vector<17xf32> to vector<17x1xf32>
    %262 = vector.broadcast %261 : vector<17x1xf32> to vector<17x17xf32>
    %263 = arith.subf %259, %262 : vector<17x17xf32>
    %264 = math.exp %263 : vector<17x17xf32>
    %cst_81 = arith.constant dense<0.000000e+00> : vector<17xf32>
    %265 = vector.multi_reduction <add>, %264, %cst_81 [1] : vector<17x17xf32> to vector<17xf32>
    %266 = vector.shape_cast %265 : vector<17xf32> to vector<17x1xf32>
    %267 = tpu.reciprocal %266 {approx = true} : vector<17x1xf32> -> vector<17x1xf32>
    %268 = vector.broadcast %267 : vector<17x1xf32> to vector<17x17xf32>
    %269 = arith.mulf %264, %268 : vector<17x17xf32>
    %270 = arith.truncf %269 : vector<17x17xf32> to vector<17x17xbf16>
    %cst_82 = arith.constant dense<0.000000e+00> : vector<17x8xf32>
    %271 = tpu.matmul %270, %256, %cst_82 {dimension_numbers = #tpu.dot_dimension_numbers<[1], [0], [0], [1], [0, 0, 1, 1], [], []>} : vector<17x17xbf16>, vector<17x8xbf16>, vector<17x8xf32> -> vector<17x8xf32>
    %272 = vector.extract_strided_slice %208 {offsets = [0, 24], sizes = [17, 8], strides = [1, 1]} : vector<17x96xf32> to vector<17x8xf32>
    %273 = arith.truncf %272 : vector<17x8xf32> to vector<17x8xbf16>
    %274 = vector.extract_strided_slice %208 {offsets = [0, 56], sizes = [17, 8], strides = [1, 1]} : vector<17x96xf32> to vector<17x8xf32>
    %275 = arith.truncf %274 : vector<17x8xf32> to vector<17x8xbf16>
    %276 = vector.extract_strided_slice %208 {offsets = [0, 88], sizes = [17, 8], strides = [1, 1]} : vector<17x96xf32> to vector<17x8xf32>
    %277 = arith.truncf %276 : vector<17x8xf32> to vector<17x8xbf16>
    "tpu.trace_start"() <{level = 10 : i32, message = "qc,kc->qk"}> : () -> ()
    %cst_83 = arith.constant dense<0.000000e+00> : vector<17x17xf32>
    %278 = tpu.matmul %273, %275, %cst_83 {dimension_numbers = #tpu.dot_dimension_numbers<[1], [1], [0], [0], [0, 0, 1, 0], [], []>} : vector<17x8xbf16>, vector<17x8xbf16>, vector<17x17xf32> -> vector<17x17xf32>
    "tpu.trace_stop"() : () -> ()
    %cst_84 = arith.constant 0.353553385 : f32
    %279 = vector.broadcast %cst_84 : f32 to vector<17x17xf32>
    %280 = arith.mulf %278, %279 : vector<17x17xf32>
    %cst_85 = arith.constant dense<0xFF800000> : vector<17xf32>
    %281 = vector.multi_reduction <maximumf>, %280, %cst_85 [1] : vector<17x17xf32> to vector<17xf32>
    %282 = vector.shape_cast %281 : vector<17xf32> to vector<17x1xf32>
    %283 = vector.broadcast %282 : vector<17x1xf32> to vector<17x17xf32>
    %284 = arith.subf %280, %283 : vector<17x17xf32>
    %285 = math.exp %284 : vector<17x17xf32>
    %cst_86 = arith.constant dense<0.000000e+00> : vector<17xf32>
    %286 = vector.multi_reduction <add>, %285, %cst_86 [1] : vector<17x17xf32> to vector<17xf32>
    %287 = vector.shape_cast %286 : vector<17xf32> to vector<17x1xf32>
    %288 = tpu.reciprocal %287 {approx = true} : vector<17x1xf32> -> vector<17x1xf32>
    %289 = vector.broadcast %288 : vector<17x1xf32> to vector<17x17xf32>
    %290 = arith.mulf %285, %289 : vector<17x17xf32>
    %291 = arith.truncf %290 : vector<17x17xf32> to vector<17x17xbf16>
    %cst_87 = arith.constant dense<0.000000e+00> : vector<17x8xf32>
    %292 = tpu.matmul %291, %277, %cst_87 {dimension_numbers = #tpu.dot_dimension_numbers<[1], [0], [0], [1], [0, 0, 1, 1], [], []>} : vector<17x17xbf16>, vector<17x8xbf16>, vector<17x8xf32> -> vector<17x8xf32>
    %293 = tpu.concatenate %229, %250, %271, %292 in 1 : vector<17x8xf32>, vector<17x8xf32>, vector<17x8xf32>, vector<17x8xf32> -> vector<17x32xf32>
    %294 = arith.truncf %293 : vector<17x32xf32> to vector<17x32xbf16>
    %c304 = arith.constant 304 : index
    %c0_88 = arith.constant 0 : index
    %295 = vector.load %arg2[%c304, %c0_88] : memref<528x128xbf16, #tpu.memory_space<vmem>>, vector<32x32xbf16>
    %cst_89 = arith.constant dense<0.000000e+00> : vector<17x32xf32>
    %296 = tpu.matmul %294, %295, %cst_89 {dimension_numbers = #tpu.dot_dimension_numbers<[1], [0], [0], [1], [0, 0, 1, 1], [], []>} : vector<17x32xbf16>, vector<32x32xbf16>, vector<17x32xf32> -> vector<17x32xf32>
    %c112_90 = arith.constant 112 : index
    %c0_91 = arith.constant 0 : index
    %297 = vector.load %arg3[%c112_90, %c0_91] : memref<176x128xf32, #tpu.memory_space<vmem>>, vector<1x32xf32>
    %298 = vector.broadcast %297 : vector<1x32xf32> to vector<17x32xf32>
    %299 = arith.addf %296, %298 : vector<17x32xf32>
    %300 = arith.addf %178, %299 : vector<17x32xf32>
    %c120 = arith.constant 120 : index
    %c0_92 = arith.constant 0 : index
    %301 = vector.load %arg3[%c120, %c0_92] : memref<176x128xf32, #tpu.memory_space<vmem>>, vector<1x32xf32>
    %c128 = arith.constant 128 : index
    %c0_93 = arith.constant 0 : index
    %302 = vector.load %arg3[%c128, %c0_93] : memref<176x128xf32, #tpu.memory_space<vmem>>, vector<1x32xf32>
    %cst_94 = arith.constant dense<0.000000e+00> : vector<17xf32>
    %303 = vector.multi_reduction <add>, %300, %cst_94 [1] : vector<17x32xf32> to vector<17xf32>
    %304 = vector.shape_cast %303 : vector<17xf32> to vector<17x1xf32>
    %cst_95 = arith.constant 3.200000e+01 : f32
    %305 = vector.broadcast %cst_95 : f32 to vector<17x1xf32>
    %306 = arith.divf %304, %305 : vector<17x1xf32>
    %307 = vector.broadcast %306 : vector<17x1xf32> to vector<17x32xf32>
    %308 = arith.subf %300, %307 : vector<17x32xf32>
    %309 = arith.mulf %308, %308 : vector<17x32xf32>
    %cst_96 = arith.constant dense<0.000000e+00> : vector<17xf32>
    %310 = vector.multi_reduction <add>, %309, %cst_96 [1] : vector<17x32xf32> to vector<17xf32>
    %311 = vector.shape_cast %310 : vector<17xf32> to vector<17x1xf32>
    %cst_97 = arith.constant 3.200000e+01 : f32
    %312 = vector.broadcast %cst_97 : f32 to vector<17x1xf32>
    %313 = arith.divf %311, %312 : vector<17x1xf32>
    %314 = vector.broadcast %306 : vector<17x1xf32> to vector<17x32xf32>
    %315 = arith.subf %300, %314 : vector<17x32xf32>
    %cst_98 = arith.constant 9.99999996E-13 : f32
    %316 = vector.broadcast %cst_98 : f32 to vector<17x1xf32>
    %317 = arith.addf %313, %316 : vector<17x1xf32>
    %318 = math.rsqrt %317 : vector<17x1xf32>
    %319 = vector.broadcast %318 : vector<17x1xf32> to vector<17x32xf32>
    %320 = arith.mulf %315, %319 : vector<17x32xf32>
    %321 = vector.broadcast %301 : vector<1x32xf32> to vector<17x32xf32>
    %322 = arith.mulf %320, %321 : vector<17x32xf32>
    %323 = vector.broadcast %302 : vector<1x32xf32> to vector<17x32xf32>
    %324 = arith.addf %322, %323 : vector<17x32xf32>
    %325 = arith.truncf %324 : vector<17x32xf32> to vector<17x32xbf16>
    %c336 = arith.constant 336 : index
    %c0_99 = arith.constant 0 : index
    %326 = vector.load %arg2[%c336, %c0_99] : memref<528x128xbf16, #tpu.memory_space<vmem>>, vector<32x128xbf16>
    %cst_100 = arith.constant dense<0.000000e+00> : vector<17x128xf32>
    %327 = tpu.matmul %325, %326, %cst_100 {dimension_numbers = #tpu.dot_dimension_numbers<[1], [0], [0], [1], [0, 0, 1, 1], [], []>} : vector<17x32xbf16>, vector<32x128xbf16>, vector<17x128xf32> -> vector<17x128xf32>
    %c136 = arith.constant 136 : index
    %c0_101 = arith.constant 0 : index
    %328 = vector.load %arg3[%c136, %c0_101] : memref<176x128xf32, #tpu.memory_space<vmem>>, vector<1x128xf32>
    %329 = vector.broadcast %328 : vector<1x128xf32> to vector<17x128xf32>
    %330 = arith.addf %327, %329 : vector<17x128xf32>
    %331 = arith.mulf %330, %330 : vector<17x128xf32>
    %332 = arith.mulf %330, %331 : vector<17x128xf32>
    %cst_102 = arith.constant 4.471500e-02 : f32
    %333 = vector.broadcast %cst_102 : f32 to vector<17x128xf32>
    %334 = arith.mulf %333, %332 : vector<17x128xf32>
    %335 = arith.addf %330, %334 : vector<17x128xf32>
    %cst_103 = arith.constant 0.797884583 : f32
    %336 = vector.broadcast %cst_103 : f32 to vector<17x128xf32>
    %337 = arith.mulf %336, %335 : vector<17x128xf32>
    %338 = math.tanh %337 : vector<17x128xf32>
    %cst_104 = arith.constant 1.000000e+00 : f32
    %339 = vector.broadcast %cst_104 : f32 to vector<17x128xf32>
    %340 = arith.addf %339, %338 : vector<17x128xf32>
    %cst_105 = arith.constant 5.000000e-01 : f32
    %341 = vector.broadcast %cst_105 : f32 to vector<17x128xf32>
    %342 = arith.mulf %341, %340 : vector<17x128xf32>
    %343 = arith.mulf %330, %342 : vector<17x128xf32>
    %344 = arith.truncf %343 : vector<17x128xf32> to vector<17x128xbf16>
    %c368 = arith.constant 368 : index
    %c0_106 = arith.constant 0 : index
    %345 = vector.load %arg2[%c368, %c0_106] : memref<528x128xbf16, #tpu.memory_space<vmem>>, vector<128x32xbf16>
    %cst_107 = arith.constant dense<0.000000e+00> : vector<17x32xf32>
    %346 = tpu.matmul %344, %345, %cst_107 {dimension_numbers = #tpu.dot_dimension_numbers<[1], [0], [0], [1], [0, 0, 1, 1], [], []>} : vector<17x128xbf16>, vector<128x32xbf16>, vector<17x32xf32> -> vector<17x32xf32>
    %c144_108 = arith.constant 144 : index
    %c0_109 = arith.constant 0 : index
    %347 = vector.load %arg3[%c144_108, %c0_109] : memref<176x128xf32, #tpu.memory_space<vmem>>, vector<1x32xf32>
    %348 = vector.broadcast %347 : vector<1x32xf32> to vector<17x32xf32>
    %349 = arith.addf %346, %348 : vector<17x32xf32>
    %350 = arith.addf %300, %349 : vector<17x32xf32>
    %351 = vector.extract_strided_slice %350 {offsets = [0, 0], sizes = [1, 32], strides = [1, 1]} : vector<17x32xf32> to vector<1x32xf32>
    %c152 = arith.constant 152 : index
    %c0_110 = arith.constant 0 : index
    %352 = vector.load %arg3[%c152, %c0_110] : memref<176x128xf32, #tpu.memory_space<vmem>>, vector<1x32xf32>
    %c160 = arith.constant 160 : index
    %c0_111 = arith.constant 0 : index
    %353 = vector.load %arg3[%c160, %c0_111] : memref<176x128xf32, #tpu.memory_space<vmem>>, vector<1x32xf32>
    %cst_112 = arith.constant dense<0.000000e+00> : vector<1xf32>
    %354 = vector.multi_reduction <add>, %351, %cst_112 [1] : vector<1x32xf32> to vector<1xf32>
    %355 = vector.shape_cast %354 : vector<1xf32> to vector<1x1xf32>
    %cst_113 = arith.constant 3.200000e+01 : f32
    %356 = vector.broadcast %cst_113 : f32 to vector<1x1xf32>
    %357 = arith.divf %355, %356 : vector<1x1xf32>
    %358 = vector.broadcast %357 : vector<1x1xf32> to vector<1x32xf32>
    %359 = arith.subf %351, %358 : vector<1x32xf32>
    %360 = arith.mulf %359, %359 : vector<1x32xf32>
    %cst_114 = arith.constant dense<0.000000e+00> : vector<1xf32>
    %361 = vector.multi_reduction <add>, %360, %cst_114 [1] : vector<1x32xf32> to vector<1xf32>
    %362 = vector.shape_cast %361 : vector<1xf32> to vector<1x1xf32>
    %cst_115 = arith.constant 3.200000e+01 : f32
    %363 = vector.broadcast %cst_115 : f32 to vector<1x1xf32>
    %364 = arith.divf %362, %363 : vector<1x1xf32>
    %365 = vector.broadcast %357 : vector<1x1xf32> to vector<1x32xf32>
    %366 = arith.subf %351, %365 : vector<1x32xf32>
    %cst_116 = arith.constant 9.99999996E-13 : f32
    %367 = vector.broadcast %cst_116 : f32 to vector<1x1xf32>
    %368 = arith.addf %364, %367 : vector<1x1xf32>
    %369 = math.rsqrt %368 : vector<1x1xf32>
    %370 = vector.broadcast %369 : vector<1x1xf32> to vector<1x32xf32>
    %371 = arith.mulf %366, %370 : vector<1x32xf32>
    %372 = arith.mulf %371, %352 : vector<1x32xf32>
    %373 = arith.addf %372, %353 : vector<1x32xf32>
    %374 = arith.truncf %373 : vector<1x32xf32> to vector<1x32xbf16>
    %c496 = arith.constant 496 : index
    %c0_117 = arith.constant 0 : index
    %375 = vector.load %arg2[%c496, %c0_117] : memref<528x128xbf16, #tpu.memory_space<vmem>>, vector<32x8xbf16>
    %cst_118 = arith.constant dense<0.000000e+00> : vector<1x8xf32>
    %376 = tpu.matmul %374, %375, %cst_118 {dimension_numbers = #tpu.dot_dimension_numbers<[1], [0], [0], [1], [0, 0, 1, 1], [], []>} : vector<1x32xbf16>, vector<32x8xbf16>, vector<1x8xf32> -> vector<1x8xf32>
    %c168 = arith.constant 168 : index
    %c0_119 = arith.constant 0 : index
    %377 = vector.load %arg3[%c168, %c0_119] : memref<176x128xf32, #tpu.memory_space<vmem>>, vector<1x8xf32>
    %378 = arith.addf %376, %377 : vector<1x8xf32>
    %c0_120 = arith.constant 0 : index
    %c0_121 = arith.constant 0 : index
    %c0_122 = arith.constant 0 : index
    %379 = vector.load %arg4[%c0_120, %c0_121, %c0_122] : memref<1x1x8xf32, #tpu.memory_space<vmem>>, vector<1x1x8xf32>
    %380 = vector.shape_cast %379 : vector<1x1x8xf32> to vector<1x8xf32>
    %381 = vector.shape_cast %378 : vector<1x8xf32> to vector<1x1x8xf32>
    tpu.vector_store %arg4[%c0_120, %c0_121, %c0_122], %381 {strides = array<i32>} : memref<1x1x8xf32, #tpu.memory_space<vmem>>, vector<1x1x8xf32>,
    return
  }
  func.func @transform_0(%arg0: i32) -> (i32, i32, i32) {
    %c0_i32 = arith.constant 0 : i32
    %c0_i32_0 = arith.constant 0 : i32
    %c0_i32_1 = arith.constant 0 : i32
    return %arg0, %c0_i32, %c0_i32_0 : i32, i32, i32
  }
  func.func @transform_1(%arg0: i32) -> (i32, i32) {
    %c0_i32 = arith.constant 0 : i32
    %c0_i32_0 = arith.constant 0 : i32
    %c0_i32_1 = arith.constant 0 : i32
    return %c0_i32, %c0_i32_0 : i32, i32
  }
  func.func @transform_2(%arg0: i32) -> (i32, i32) {
    %c0_i32 = arith.constant 0 : i32
    %c0_i32_0 = arith.constant 0 : i32
    %c0_i32_1 = arith.constant 0 : i32
    return %c0_i32, %c0_i32_0 : i32, i32
  }
  func.func @transform_3(%arg0: i32) -> (i32, i32, i32) {
    %c0_i32 = arith.constant 0 : i32
    %c0_i32_0 = arith.constant 0 : i32
    %c0_i32_1 = arith.constant 0 : i32
    return %arg0, %c0_i32, %c0_i32_0 : i32, i32, i32
  }
}

</mosaic_0001>

<bundles_post_ra>
// kernel: forward.1
= control target key start
LH: loop header
LB: loop body
LE: loop exit
PB: predicated region body
PF: predicated region fallthrough
CT: control target
= control target key end

     0   :  { %8 = vsyncpa [#allocation3], 0  ;;  %s4317_s0 = inlined_call_operand.vmem [shape: f32[2,17,48], index: 0, kind: input, shape index: {}]   ;;  %s4318_s1 = inlined_call_operand.vmem [shape: bf16[528,128], index: 1, kind: input, shape index: {}]   ;;  %s4319_s2 = inlined_call_operand.vmem [shape: f32[176,128], index: 2, kind: input, shape index: {}]   ;;  %s4320_s3 = inlined_call_operand.hbm [shape: f32[2,1,8], index: 3, kind: output, shape index: {}]  }
   0x1   :  { %10 = vsyncpa [#allocation3 + $0x1], 0  ;;  %s3657_s12 = smov 0   ;;  %s3659_s13 = smov 0  }
   0x2   :  { %s3661_s14 = smov 0   ;;  %s3663_s15 = smov 0  }
   0x3 LB: > { %s3678_s16 = sadd.s32 4294967295, %s3617_s15   ;;  %s2831_s17 = sadd.s32 4294967294, %s3617_s15   ;;  %s3617_s15 = sphi %s3663_s15, %s4338_s15   ;;  %s3613_s14 = sphi %s3661_s14, %s4337_s14   ;;  %s3609_s13 = sphi %s3659_s13, %s4336_s13   ;;  %s3605_s12 = sphi %s3657_s12, %s4335_s12  }
   0x4   : > { %s3682_s18 = sadd.s32 1, %s3617_s15   ;;  %s91_s19 = sadd.s32 1, %s3613_s14 }
   0x5   : > { %s88_s20 = ssub.s32 %s3617_s15, %s3682_s18  ;;  %p101_p0 = scmp.ne.s32.totalorder %s3613_s14, %s3609_s13 }
   0x6   : > { %p89_p1 = scmp.eq.s32.totalorder %s88_s20, 0  ;;  %p102_p2 = scmp.eq.s32.totalorder %s3678_s16, 1 }
   0x7   : > { %p107_p3 = scmp.ne.s32.totalorder %s3609_s13, %s3605_s12  ;;  %p108_p4 = scmp.eq.s32.totalorder %s2831_s17, 1 }
   0x8   : > { %s3693_s21 = scalar_select %p89_p1, %s3613_s14, %s91_s19  }
   0x9   : > { %p3695_p5 = por %p102_p2, %p101_p0  ;;  %p3699_p6 = por %p108_p4, %p107_p3 }
   0xa   : > { %p2834_p7 = scmp.ge.s32.totalorder %s3617_s15, 1  ;;  %p140_p8 = scmp.lt.s32.totalorder %s3617_s15, 3 }
   0xc   : > { %p141_p9 = pnand %p2834_p7, %p140_p8 }
   0xd   : > { %v3388_v0 = vld [vmem:[%s4318_s1] sm:$0xff] (!%p141_p9)   ;;  %p163_p10 = scmp.lt.s32.totalorder (!%p141_p9), %s3678_s16, 1  ;;  %v3389_v1 = vld [vmem:[%s4318_s1 + $0x8] sm:$0xff] (!%p141_p9)   ;;  %v3390_v2 = vld [vmem:[%s4318_s1 + $0x10] sm:$0xff] (!%p141_p9)   ;;  %vm201_vm0 = vcmask (!%p141_p9), 392192   ;;  %vm265_vm1 = vcmask (!%p141_p9), 253952  }
   0xe   : > { %144 = sbr.rel (%p141_p9) target bundleno = 8725 (0x2215), region = 32  ;;  %3051 = vmatprep.subr.bf16.mxu1 (!%p141_p9), %v3388_v0  ;;  %v182_v8 = vld [vmem:[%s4319_s2 + $0x10] sm:$0x1] (!%p141_p9)  ;;  %v180_v9 = vld [vmem:[%s4319_s2] sm:$0xff] (!%p141_p9)  ;;  %v181_v13 = vld [vmem:[%s4319_s2 + $0x8] sm:$0xff] (!%p141_p9)  ;;  %vm258_vm2 = vcmask (!%p141_p9), 261120  }
   0xf   : > { %3052 = vmatpush3.bf16.msra.mxu1 (!%p141_p9), %v3388_v0  ;;  %v3391_v36 = vld [vmem:[%s4318_s1 + $0x18] sm:$0xff] (!%p141_p9)   ;;  %v3392_v37 = vld [vmem:[%s4318_s1 + $0x20] sm:$0xff] (!%p141_p9)   ;;  %v2843_v63 = vld [vmem:[%s4319_s2 + $0x28] ss:$0 sm:$0xff] (!%p141_p9)  ;;  %s3619_s6 = smov (!%p141_p9), 96   ;;  %vm399_vm3 = vcmask (!%p141_p9), 64512  }
  0x10   : > { %3053 = vmatprep.subr.bf16.mxu1 (!%p141_p9), %v3389_v1  ;;  %v2841_v49 = vld [vmem:[%s4319_s2 + $0x18] ss:$0 sm:$0xff] (!%p141_p9)  ;;  %v2842_v55 = vld [vmem:[%s4319_s2 + $0x20] ss:$0 sm:$0xff] (!%p141_p9)  ;;  %vm463_vm4 = vcmask (!%p141_p9), 138240   ;;  %vm470_vm5 = vcmask (!%p141_p9), 131072  }
  0x11   : > { %s3621_s8 = smov (!%p141_p9), 120   ;;  %s3622_s9 = smov (!%p141_p9), 88   ;;  %vm511_vm6 = vcmask (!%p141_p9), 1040384   ;;  %vm1108_vm7 = vcmask (!%p141_p9), 130048   ;;  %vm1112_vm8 = vcmask (!%p141_p9), 195584   ;;  %vm3635_vm9 = vmmov (!%p141_p9), 0  }
  0x12   : > { %s3624_s10 = smov (!%p141_p9), 56   ;;  %s3625_s11 = smov (!%p141_p9), 80   ;;  %vm2761_vm10 = vcmask (!%p141_p9), 57344  }
  0x13   : > { %3054 = vmatpush3.bf16.msra.mxu1 (!%p141_p9), %v3389_v1  ;;  %s3626_s17 = smov (!%p141_p9), 112   ;;  %s3627_s19 = smov (!%p141_p9), 48  }
  0x14   : > { %3055 = vmatprep.subr.bf16.mxu1 (!%p141_p9), %v3390_v2  ;;  %s3628_s20 = smov (!%p141_p9), 72   ;;  %s3629_s24 = smov (!%p141_p9), 104  }
  0x15   : > { %s164_s28 = scalar_select %p163_p10, %s3678_s16, 1 }
  0x16   : > { %s4327_s25 = smov 40   ;;  %s4325_s26 = smov 8  }
  0x17   : > { %s3301_s4 = smul.u32 24, %s164_s28  ;;  %3056 = vmatpush3.bf16.msra.mxu1 %v3390_v2  ;;  %s4323_s27 = smov 16  }
  0x18   : > { %3061 = vmatprep.subr.bf16.mxu1 %v3391_v36  ;;  %s4321_s5 = smov 24  }
  0x19   : > { %s167_s7 = scalar_lea.vmem %s4317_s0, %s3301_s4  ;;  %s2932_s4 = sshll.u32 %s3678_s16, 4 }
  0x1a   : > { %v169_v3 = vld [vmem:[%s167_s7] sm:$0xff]  ;;  %v170_v4 = vld [vmem:[%s167_s7 + $0x8] sm:$0xff]  ;;  %v171_v5 = vld [vmem:[%s167_s7 + $0x10] sm:$0x1]  ;;  %s3620_s7 = smov 64  }
  0x1b   : > { %v172_v6 = vpack.c.bf16 %v170_v4, %v169_v3  ;;  %v173_v7 = vpack.c.bf16 %v171_v5, %v171_v5 }
  0x1d   : > { %3057 = vmatprep.mubr.msk.bf16.mxu1 %vm201_vm0, %v172_v6 }
  0x1e   : > { %3058 = vmatmul.mubr.msk.bf16.vlgmr.msra.gmra.mrb[0].mxu1 %vm201_vm0, %v173_v7 }
  0x1f   : > { %3062 = vmatpush3.bf16.msra.mxu1 %v3391_v36 }
  0x20   : > { %3063 = vmatprep.subr.bf16.mxu1 %v3392_v37 }
  0x23   : > { %3064 = vmatpush3.bf16.msra.mxu1 %v3392_v37 }
  0xf1   : > { %v3059_v10 = vpop.f32.mrb[0].mxu1 }
  0xf2   : > { %v3725_v11 = vadd.f32 %v3059_v10, %v182_v8  ;;  %v242_v12 = vpop.f32.mrb[1].mxu1 }
  0xf3   : > { %v3730_v14 = vadd.f32 %v242_v12, %v180_v9  ;;  %v3060_v15 = vpop.f32.mrb[2].mxu1 }
  0xf4   : > { %v245_v16 = vpop.f32.mrb[3].mxu1  ;;  %v266_v17 = vsel %vm265_vm1, %v3725_v11, 0.0 }
  0xf5   : > { %v3734_v18 = vadd.f32 %v245_v16, %v181_v13  ;;  %267 = vadd.xlane.f32.xlu1 %v266_v17  ;;  %v259_v19 = vsel %vm258_vm2, %v3730_v14, 0.0 }
  0xf6   : > { %260 = vadd.xlane.f32.xlu0 %v259_v19 }
  0xf7   : > { %v262_v20 = vsel %vm258_vm2, %v3734_v18, 0.0 }
  0xfa   : > { %263 = vadd.xlane.f32.xlu0 %v262_v20 }
 0x182   : > { %v268_v21 = vpop.xlane.xlu1 %267 }
 0x183   : > { %v272_v22 = vmul.f32 0.03125, %v268_v21  ;;  %v261_v23 = vpop.xlane.xlu0 %260 }
 0x184   : > { %v270_v24 = vmul.f32 0.03125, %v261_v23 }
 0x185   : > { %v275_v25 = vsub.f32 %v3725_v11, %v272_v22 }
 0x186   : > { %v273_v26 = vsub.f32 %v3730_v14, %v270_v24 }
 0x187   : > { %v264_v27 = vpop.xlane.xlu0 %263  ;;  %v278_v32 = vmul.f32 %v275_v25, %v275_v25 }
 0x188   : > { %v271_v28 = vmul.f32 0.03125, %v264_v27  ;;  %v276_v29 = vmul.f32 %v273_v26, %v273_v26 }
 0x189   : > { %v285_v34 = vsel %vm265_vm1, %v278_v32, 0.0 }
 0x18a   : > { %v274_v30 = vsub.f32 %v3734_v18, %v271_v28  ;;  %v279_v31 = vsel %vm258_vm2, %v276_v29, 0.0 }
 0x18b   : > { %280 = vadd.xlane.f32.xlu1 %v279_v31 }
 0x18c   : > { %v277_v33 = vmul.f32 %v274_v30, %v274_v30 }
 0x18e   : > { %v282_v35 = vsel %vm258_vm2, %v277_v33, 0.0 }
 0x18f   : > { %286 = vadd.xlane.f32.xlu1 %v285_v34  ;;  %283 = vadd.xlane.f32.xlu0 %v282_v35 }
 0x218   : > { %v281_v38 = vpop.xlane.xlu1 %280 }
 0x219   : > { %v288_v39 = vmul.f32 0.03125, %v281_v38 }
 0x21b   : > { %v291_v40 = vadd.f32 1e-12, %v288_v39 }
 0x21c   : > { %v287_v41 = vpop.xlane.xlu1 %286  ;;  %v284_v42 = vpop.xlane.xlu0 %283 }
 0x21d   : > { %3421 = vrsqrt.f32 %v291_v40  ;;  %v290_v43 = vmul.f32 0.03125, %v287_v41  ;;  %v289_v44 = vmul.f32 0.03125, %v284_v42 }
 0x21f   : > { %v293_v45 = vadd.f32 1e-12, %v290_v43  ;;  %v292_v46 = vadd.f32 1e-12, %v289_v44 }
 0x221   : > { %3423 = vrsqrt.f32 %v293_v45  ;;  %v3623_v45 = vmov 0  }
 0x222   : > { %3425 = vrsqrt.f32 %v292_v46  ;;  %v3797_v46 = vsel %vm511_vm6, 65535, %v3623_v45 }
 0x227   : > { %v3422_v47 = vpop.eup %3421 }
 0x228   : > { %v297_v48 = vmul.f32 %v3422_v47, %v273_v26 }
 0x22a   : > { %v304_v54 = vmul.f32 %v2841_v49, %v297_v48 }
 0x22b   : > { %v3424_v50 = vpop.eup %3423 }
 0x22c   : > { %v3426_v51 = vpop.eup %3425  ;;  %v299_v52 = vmul.f32 %v3424_v50, %v275_v25  ;;  %v311_v59 = vadd.f32 %v2842_v55, %v304_v54 }
 0x22d   : > { %v298_v53 = vmul.f32 %v3426_v51, %v274_v30 }
 0x22e   : > { %v306_v56 = vmul.f32 %v2841_v49, %v299_v52 }
 0x22f   : > { %v305_v57 = vmul.f32 %v2841_v49, %v298_v53 }
 0x230   : > { %v313_v58 = vadd.f32 %v2842_v55, %v306_v56 }
 0x231   : > { %v312_v60 = vadd.f32 %v2842_v55, %v305_v57 }
 0x232   : > { %v315_v61 = vpack.c.bf16 %v313_v58, %v313_v58 }
 0x233   : > { %v314_v62 = vpack.c.bf16 %v312_v60, %v311_v59 }
 0x235   : > { %3065 = vmatprep.mubr.msk.bf16.mxu1 %vm258_vm2, %v314_v62 }
 0x236   : > { %3066 = vmatmul.mubr.msk.bf16.vlgmr.msra.gmra.mrb[4].mxu1 %vm258_vm2, %v315_v61 }
 0x309   : > { %v3067_v0 = vpop.f32.mrb[4].mxu1 }
 0x30a   : > { %v386_v1 = vadd.f32 %v3067_v0, %v2843_v63  ;;  %v377_v2 = vpop.f32.mrb[5].mxu1 }
 0x30b   : > { %v3068_v3 = vpop.f32.mrb[6].mxu1  ;;  %v378_v6 = vadd.f32 %v2843_v63, %v377_v2 }
 0x30c   : > { %v3763_v4 = vpack.c.bf16 %v386_v1, %v386_v1  ;;  %v380_v5 = vpop.f32.mrb[7].mxu1 }
 0x30d   : > { %v381_v7 = vadd.f32 %v2843_v63, %v380_v5 }
 0x30e   : > { %397 = vrot.lane.b32.xlu1 %v3763_v4, %s3619_s6 }
 0x30f   : > { %v3767_v8 = vpack.c.bf16 %v381_v7, %v378_v6 }
 0x311   : > { %395 = vrot.lane.b32.xlu0 %v3767_v8, %s3619_s6  ;;  %3073 = vmatprep.mubr.msk.bf16.mxu1 %vm399_vm3, %v3767_v8 }
 0x380   : > { %v398_v12 = vpop.permute.xlu1 %397 }
 0x381   : > { %v410_v13 = vsel %vm399_vm3, %v398_v12, 0 }
 0x383   : > { %v396_v9 = vpop.permute.xlu0 %395 }
 0x384   : > { %3285 = vmatprep.subr.msk.bf16.mxu1 %vm399_vm3, %v396_v9  ;;  %v407_v10 = vsel %vm399_vm3, %v396_v9, 0 }
 0x385   : > { %3070 = vmatpush3.bf16.xpose.msra.mxu1 %v407_v10 }
 0x386   : > { %3286 = vmatprep.subr.msk.bf16.mxu1 %vm399_vm3, %v398_v12 }
 0x38d   : > { %3072 = vmatpush3.bf16.xpose.msra.mxu1 %v410_v13 }
 0x394   : > { %3074 = vmatmul.mubr.msk.bf16.vlgmr.msra.gmra.mrb[8].mxu1 %vm399_vm3, %v3763_v4 }
 0x467   : > { %v3075_v15 = vpop.f32.mrb[8].mxu1 }
 0x468   : > { %v446_v16 = vpop.f32.mrb[9].mxu1  ;;  %v462_v23 = vmul.f32 0.35355338, %v3075_v15 }
 0x469   : > { %v460_v17 = vmul.f32 0.35355338, %v446_v16  ;;  %v3076_v19 = vpop.f32.mrb[10].mxu1 }
 0x46a   : > { %v449_v20 = vpop.f32.mrb[11].mxu1  ;;  %v471_v25 = vsel %vm470_vm5, %v462_v23, -inf }
 0x46b   : > { %v461_v21 = vmul.f32 0.35355338, %v449_v20  ;;  %v464_v22 = vsel %vm463_vm4, %v460_v17, -inf }
 0x46c   : > { %465 = vmax.xlane.f32.xlu1 %v464_v22 }
 0x46d   : > { %v467_v24 = vsel %vm463_vm4, %v461_v21, -inf }
 0x46e   : > { %468 = vmax.xlane.f32.xlu0 %v467_v24 }
 0x472   : > { %472 = vmax.xlane.f32.xlu0 %v471_v25 }
 0x4f9   : > { %v466_v26 = vpop.xlane.xlu1 %465 }
 0x4fa   : > { %v474_v29 = vsub.f32 %v460_v17, %v466_v26 }
 0x4fb   : > { %v469_v27 = vpop.xlane.xlu0 %468 }
 0x4fc   : > { %v475_v28 = vsub.f32 %v461_v21, %v469_v27  ;;  %v477_v33 = vmul.f32 1.442695, %v474_v29 }
 0x4fe   : > { %v479_v30 = vmul.f32 1.442695, %v475_v28 }
 0x4ff   : > { %v473_v31 = vpop.xlane.xlu0 %472 }
 0x500   : > { %3427 = vpow2.f32 %v479_v30  ;;  %v476_v32 = vsub.f32 %v462_v23, %v473_v31 }
 0x502   : > { %v481_v34 = vmul.f32 1.442695, %v476_v32 }
 0x504   : > { %3429 = vpow2.f32 %v481_v34 }
 0x505   : > { %3431 = vpow2.f32 %v477_v33 }
 0x50a   : > { %v3428_v35 = vpop.eup %3427 }
 0x50b   : > { %v486_v36 = vsel %vm463_vm4, %v3428_v35, 0.0 }
 0x50c   : > { %487 = vadd.xlane.f32.xlu0 %v486_v36 }
 0x50e   : > { %v3430_v37 = vpop.eup %3429 }
 0x50f   : > { %v489_v38 = vsel %vm470_vm5, %v3430_v37, 0.0  ;;  %v3432_v39 = vpop.eup %3431 }
 0x510   : > { %490 = vadd.xlane.f32.xlu1 %v489_v38  ;;  %v483_v40 = vsel %vm463_vm4, %v3432_v39, 0.0 }
 0x514   : > { %484 = vadd.xlane.f32.xlu1 %v483_v40 }
 0x522   : > { %500 = vrot.lane.b32.xlu0 %v3767_v8, %s3620_s7 }
 0x525   : > { %502 = vrot.lane.b32.xlu1 %v3763_v4, %s3620_s7 }
 0x526   : > { %565 = vrot.lane.b32.xlu0 %v3767_v8, %s3621_s8 }
 0x529   : > { %569 = vrot.lane.b32.xlu1 %v3767_v8, %s3622_s9 }
 0x52d   : > { %571 = vrot.lane.b32.xlu1 %v3763_v4, %s3622_s9 }
 0x531   : > { %567 = vrot.lane.b32.xlu1 %v3763_v4, %s3621_s8 }
 0x599   : > { %v488_v41 = vpop.xlane.xlu0 %487 }
 0x59d   : > { %v491_v42 = vpop.xlane.xlu1 %490  ;;  %v501_v43 = vpop.permute.xlu0 %500 }
 0x59e   : > { %3077 = vmatprep.subr.bf16.mxu0 %v501_v43  ;;  %3433 = vrcp.f32 %v491_v42 }
 0x59f   : > { %3078 = vmatpush3.bf16.msra.mxu0 %v501_v43  ;;  %3435 = vrcp.f32 %v488_v41 }
 0x5a1   : > { %v485_v44 = vpop.xlane.xlu1 %484  ;;  %v566_v58 = vpop.permute.xlu0 %565 }
 0x5a2   : > { %3437 = vrcp.f32 %v485_v44 }
 0x5a5   : > { %v503_v47 = vpop.permute.xlu1 %502 }
 0x5a6   : > { %v515_v48 = vand.u32 %v3797_v46, %v503_v47 }
 0x5a8   : > { %3079 = vmatprep.subr.bf16.mxu0 %v515_v48  ;;  %v3434_v49 = vpop.eup %3433 }
 0x5a9   : > { %v570_v50 = vpop.permute.xlu1 %569  ;;  %3080 = vmatpush3.bf16.msra.mxu0 %v515_v48  ;;  %v3436_v51 = vpop.eup %3435  ;;  %v497_v53 = vmul.f32 %v3434_v49, %v3430_v37 }
 0x5aa   : > { %3287 = vmatprep.subr.msk.bf16.mxu0 %vm399_vm3, %v570_v50  ;;  %v496_v55 = vmul.f32 %v3436_v51, %v3428_v35  ;;  %v580_v59 = vsel %vm399_vm3, %v570_v50, 0 }
 0x5ab   : > { %v499_v57 = vpack.c.bf16 %v497_v53, %v497_v53 }
 0x5ac   : > { %v3438_v52 = vpop.eup %3437 }
 0x5ad   : > { %v495_v54 = vmul.f32 %v3438_v52, %v3432_v39  ;;  %v572_v60 = vpop.permute.xlu1 %571 }
 0x5ae   : > { %v583_v61 = vsel %vm399_vm3, %v572_v60, 0 }
 0x5af   : > { %v498_v56 = vpack.c.bf16 %v496_v55, %v495_v54 }
 0x5b1   : > { %3081 = vmatprep.mubr.msk.bf16.mxu0 %vm463_vm4, %v498_v56  ;;  %v568_v62 = vpop.permute.xlu1 %567 }
 0x5b2   : > { %3082 = vmatmul.mubr.msk.bf16.vlgmr.msra.gmra.mrb[0].mxu0 %vm463_vm4, %v499_v57 }
 0x5b3   : > { %3086 = vmatpush3.bf16.xpose.msra.mxu0 %v580_v59  ;;  %3089 = vmatprep.mubr.msk.bf16.mxu0 %vm399_vm3, %v566_v58 }
 0x5b4   : > { %3288 = vmatprep.subr.msk.bf16.mxu0 %vm399_vm3, %v572_v60 }
 0x5bb   : > { %3088 = vmatpush3.bf16.xpose.msra.mxu0 %v583_v61 }
 0x5c2   : > { %3090 = vmatmul.mubr.msk.bf16.vlgmr.msra.gmra.mrb[4].mxu0 %vm399_vm3, %v568_v62 }
 0x685   : > { %v3808_v63 = vpop.f32.mrb[0].mxu0 }
 0x686   : > { %v3810_v0 = vpop.f32.mrb[1].mxu0 }
 0x687   : > { %v3084_v1 = vpop.f32.mrb[2].mxu0 }
 0x688   : > { %v3812_v2 = vpop.f32.mrb[3].mxu0 }
 0x695   : > { %v3091_v3 = vpop.f32.mrb[4].mxu0 }
 0x696   : > { %v619_v5 = vpop.f32.mrb[5].mxu0  ;;  %v635_v10 = vmul.f32 0.35355338, %v3091_v3 }
 0x697   : > { %v633_v6 = vmul.f32 0.35355338, %v619_v5  ;;  %v3092_v7 = vpop.f32.mrb[6].mxu0 }
 0x698   : > { %v622_v9 = vpop.f32.mrb[7].mxu0  ;;  %v642_v16 = vsel %vm470_vm5, %v635_v10, -inf }
 0x699   : > { %v634_v12 = vmul.f32 0.35355338, %v622_v9  ;;  %v636_v13 = vsel %vm463_vm4, %v633_v6, -inf }
 0x69a   : > { %637 = vmax.xlane.f32.xlu0 %v636_v13 }
 0x69b   : > { %v639_v15 = vsel %vm463_vm4, %v634_v12, -inf }
 0x69c   : > { %640 = vmax.xlane.f32.xlu1 %v639_v15 }
 0x69e   : > { %643 = vmax.xlane.f32.xlu0 %v642_v16 }
 0x727   : > { %v638_v17 = vpop.xlane.xlu0 %637 }
 0x728   : > { %v645_v19 = vsub.f32 %v633_v6, %v638_v17 }
 0x729   : > { %v641_v20 = vpop.xlane.xlu1 %640 }
 0x72a   : > { %v648_v21 = vmul.f32 1.442695, %v645_v19  ;;  %v646_v22 = vsub.f32 %v634_v12, %v641_v20 }
 0x72b   : > { %v644_v23 = vpop.xlane.xlu0 %643 }
 0x72c   : > { %3439 = vpow2.f32 %v648_v21  ;;  %v650_v24 = vmul.f32 1.442695, %v646_v22  ;;  %v647_v25 = vsub.f32 %v635_v10, %v644_v23 }
 0x72e   : > { %3441 = vpow2.f32 %v650_v24  ;;  %v652_v26 = vmul.f32 1.442695, %v647_v25 }
 0x730   : > { %3443 = vpow2.f32 %v652_v26 }
 0x736   : > { %v3440_v27 = vpop.eup %3439 }
 0x737   : > { %v654_v28 = vsel %vm463_vm4, %v3440_v27, 0.0 }
 0x738   : > { %v3442_v29 = vpop.eup %3441  ;;  %655 = vadd.xlane.f32.xlu0 %v654_v28 }
 0x739   : > { %v657_v32 = vsel %vm463_vm4, %v3442_v29, 0.0 }
 0x73a   : > { %v3444_v30 = vpop.eup %3443 }
 0x73b   : > { %v660_v31 = vsel %vm470_vm5, %v3444_v30, 0.0 }
 0x73c   : > { %661 = vadd.xlane.f32.xlu1 %v660_v31  ;;  %658 = vadd.xlane.f32.xlu0 %v657_v32 }
 0x74d   : > { %673 = vrot.lane.b32.xlu1 %v3763_v4, %s3624_s10 }
 0x751   : > { %737 = vrot.lane.b32.xlu1 %v3767_v8, %s3625_s11 }
 0x752   : > { %671 = vrot.lane.b32.xlu0 %v3767_v8, %s3624_s10 }
 0x755   : > { %739 = vrot.lane.b32.xlu1 %v3763_v4, %s3625_s11 }
 0x756   : > { %733 = vrot.lane.b32.xlu0 %v3767_v8, %s3626_s17 }
 0x759   : > { %735 = vrot.lane.b32.xlu1 %v3763_v4, %s3626_s17 }
 0x7c5   : > { %v656_v33 = vpop.xlane.xlu0 %655 }
 0x7c6   : > { %3445 = vrcp.f32 %v656_v33 }
 0x7c9   : > { %v659_v34 = vpop.xlane.xlu0 %658  ;;  %v662_v35 = vpop.xlane.xlu1 %661 }
 0x7ca   : > { %3447 = vrcp.f32 %v659_v34 }
 0x7cb   : > { %3449 = vrcp.f32 %v662_v35 }
 0x7cd   : > { %v672_v36 = vpop.permute.xlu0 %671  ;;  %v674_v37 = vpop.permute.xlu1 %673 }
 0x7ce   : > { %v683_v38 = vand.u32 %v674_v37, %v3797_v46  ;;  %3093 = vmatprep.subr.bf16.mxu1 %v672_v36 }
 0x7cf   : > { %3094 = vmatpush3.bf16.msra.mxu1 %v672_v36 }
 0x7d0   : > { %3095 = vmatprep.subr.bf16.mxu1 %v683_v38  ;;  %v3446_v39 = vpop.eup %3445 }
 0x7d1   : > { %v738_v40 = vpop.permute.xlu1 %737  ;;  %v666_v43 = vmul.f32 %v3446_v39, %v3440_v27  ;;  %v734_v49 = vpop.permute.xlu0 %733 }
 0x7d2   : > { %v748_v50 = vsel %vm399_vm3, %v738_v40, 0 }
 0x7d3   : > { %3096 = vmatpush3.bf16.msra.mxu1 %v683_v38 }
 0x7d4   : > { %v3448_v41 = vpop.eup %3447  ;;  %3289 = vmatprep.subr.msk.bf16.mxu1 %vm399_vm3, %v738_v40 }
 0x7d5   : > { %v3450_v42 = vpop.eup %3449  ;;  %v667_v44 = vmul.f32 %v3448_v41, %v3442_v29  ;;  %v740_v51 = vpop.permute.xlu1 %739 }
 0x7d6   : > { %v668_v45 = vmul.f32 %v3450_v42, %v3444_v30  ;;  %v751_v52 = vsel %vm399_vm3, %v740_v51, 0 }
 0x7d7   : > { %v669_v47 = vpack.c.bf16 %v667_v44, %v666_v43 }
 0x7d8   : > { %v670_v48 = vpack.c.bf16 %v668_v45, %v668_v45 }
 0x7d9   : > { %3097 = vmatprep.mubr.msk.bf16.mxu1 %vm463_vm4, %v669_v47  ;;  %v736_v53 = vpop.permute.xlu1 %735 }
 0x7da   : > { %3098 = vmatmul.mubr.msk.bf16.vlgmr.msra.gmra.mrb[12].mxu1 %vm463_vm4, %v670_v48 }
 0x7db   : > { %3105 = vmatprep.mubr.msk.bf16.mxu1 %vm399_vm3, %v734_v49 }
 0x7dc   : > { %3102 = vmatpush3.bf16.xpose.msra.mxu1 %v748_v50 }
 0x7dd   : > { %3290 = vmatprep.subr.msk.bf16.mxu1 %vm399_vm3, %v740_v51 }
 0x7e4   : > { %3104 = vmatpush3.bf16.xpose.msra.mxu1 %v751_v52 }
 0x7eb   : > { %3106 = vmatmul.mubr.msk.bf16.vlgmr.msra.gmra.mrb[16].mxu1 %vm399_vm3, %v736_v53 }
 0x8ad   : > { %v3841_v54 = vpop.f32.mrb[12].mxu1 }
 0x8ae   : > { %v3843_v55 = vpop.f32.mrb[13].mxu1 }
 0x8af   : > { %v3100_v56 = vpop.f32.mrb[14].mxu1 }
 0x8b0   : > { %v3845_v57 = vpop.f32.mrb[15].mxu1 }
 0x8b1   : > { %v3358_v58 = vpack.i.bf16 %v3845_v57, %v3843_v55 }
 0x8be   : > { %v3107_v59 = vpop.f32.mrb[16].mxu1 }
 0x8bf   : > { %v787_v60 = vpop.f32.mrb[17].mxu1  ;;  %v803_v3 = vmul.f32 0.35355338, %v3107_v59 }
 0x8c0   : > { %v801_v61 = vmul.f32 0.35355338, %v787_v60  ;;  %v3108_v62 = vpop.f32.mrb[18].mxu1 }
 0x8c1   : > { %v790_v1 = vpop.f32.mrb[19].mxu1  ;;  %v810_v9 = vsel %vm470_vm5, %v803_v3, -inf }
 0x8c2   : > { %v802_v5 = vmul.f32 0.35355338, %v790_v1  ;;  %v804_v6 = vsel %vm463_vm4, %v801_v61, -inf }
 0x8c3   : > { %805 = vmax.xlane.f32.xlu0 %v804_v6 }
 0x8c4   : > { %v807_v7 = vsel %vm463_vm4, %v802_v5, -inf }
 0x8c5   : > { %808 = vmax.xlane.f32.xlu1 %v807_v7 }
 0x8c7   : > { %811 = vmax.xlane.f32.xlu0 %v810_v9 }
 0x950   : > { %v806_v10 = vpop.xlane.xlu0 %805 }
 0x951   : > { %v813_v12 = vsub.f32 %v801_v61, %v806_v10 }
 0x952   : > { %v809_v13 = vpop.xlane.xlu1 %808 }
 0x953   : > { %v816_v15 = vmul.f32 1.442695, %v813_v12  ;;  %v814_v16 = vsub.f32 %v802_v5, %v809_v13 }
 0x954   : > { %v812_v17 = vpop.xlane.xlu0 %811 }
 0x955   : > { %3451 = vpow2.f32 %v816_v15  ;;  %v818_v19 = vmul.f32 1.442695, %v814_v16  ;;  %v815_v20 = vsub.f32 %v803_v3, %v812_v17 }
 0x957   : > { %3453 = vpow2.f32 %v818_v19  ;;  %v820_v21 = vmul.f32 1.442695, %v815_v20 }
 0x959   : > { %3455 = vpow2.f32 %v820_v21 }
 0x95f   : > { %v3452_v22 = vpop.eup %3451 }
 0x960   : > { %v822_v23 = vsel %vm463_vm4, %v3452_v22, 0.0 }
 0x961   : > { %v3454_v24 = vpop.eup %3453  ;;  %823 = vadd.xlane.f32.xlu0 %v822_v23 }
 0x962   : > { %v825_v27 = vsel %vm463_vm4, %v3454_v24, 0.0 }
 0x963   : > { %v3456_v25 = vpop.eup %3455 }
 0x964   : > { %v828_v26 = vsel %vm470_vm5, %v3456_v25, 0.0 }
 0x965   : > { %829 = vadd.xlane.f32.xlu1 %v828_v26  ;;  %826 = vadd.xlane.f32.xlu0 %v825_v27 }
 0x976   : > { %841 = vrot.lane.b32.xlu1 %v3763_v4, %s3627_s19 }
 0x97a   : > { %905 = vrot.lane.b32.xlu1 %v3767_v8, %s3628_s20 }
 0x97b   : > { %839 = vrot.lane.b32.xlu0 %v3767_v8, %s3627_s19 }
 0x97e   : > { %907 = vrot.lane.b32.xlu1 %v3763_v4, %s3628_s20 }
 0x97f   : > { %901 = vrot.lane.b32.xlu0 %v3767_v8, %s3629_s24 }
 0x982   : > { %903 = vrot.lane.b32.xlu1 %v3763_v4, %s3629_s24 }
 0x9ee   : > { %v824_v28 = vpop.xlane.xlu0 %823 }
 0x9ef   : > { %3457 = vrcp.f32 %v824_v28 }
 0x9f2   : > { %v827_v29 = vpop.xlane.xlu0 %826  ;;  %v830_v30 = vpop.xlane.xlu1 %829 }
 0x9f3   : > { %3459 = vrcp.f32 %v827_v29 }
 0x9f4   : > { %3461 = vrcp.f32 %v830_v30 }
 0x9f6   : > { %v840_v31 = vpop.permute.xlu0 %839  ;;  %v842_v32 = vpop.permute.xlu1 %841 }
 0x9f7   : > { %v851_v33 = vand.u32 %v842_v32, %v3797_v46  ;;  %3109 = vmatprep.subr.bf16.mxu0 %v840_v31 }
 0x9f8   : > { %3110 = vmatpush3.bf16.msra.mxu0 %v840_v31 }
 0x9f9   : > { %3111 = vmatprep.subr.bf16.mxu0 %v851_v33  ;;  %v3458_v34 = vpop.eup %3457 }
 0x9fa   : > { %v906_v35 = vpop.permute.xlu1 %905  ;;  %v834_v38 = vmul.f32 %v3458_v34, %v3452_v22  ;;  %v902_v43 = vpop.permute.xlu0 %901 }
 0x9fb   : > { %v916_v44 = vsel %vm399_vm3, %v906_v35, 0 }
 0x9fc   : > { %3112 = vmatpush3.bf16.msra.mxu0 %v851_v33 }
 0x9fd   : > { %v3460_v36 = vpop.eup %3459  ;;  %3291 = vmatprep.subr.msk.bf16.mxu0 %vm399_vm3, %v906_v35  ;;  %v3393_v35 = vld [vmem:[%s4318_s1 + $0x28] sm:$0xff]  }
 0x9fe   : > { %v3462_v37 = vpop.eup %3461  ;;  %v835_v39 = vmul.f32 %v3460_v36, %v3454_v24  ;;  %v908_v45 = vpop.permute.xlu1 %907  ;;  %v3394_v36 = vld [vmem:[%s4318_s1 + $0x30] sm:$0xff]  }
 0x9ff   : > { %v836_v40 = vmul.f32 %v3462_v37, %v3456_v25  ;;  %v919_v47 = vsel %vm399_vm3, %v908_v45, 0 }
 0xa00   : > { %v837_v41 = vpack.c.bf16 %v835_v39, %v834_v38 }
 0xa01   : > { %v838_v42 = vpack.c.bf16 %v836_v40, %v836_v40 }
 0xa02   : > { %3113 = vmatprep.mubr.msk.bf16.mxu0 %vm463_vm4, %v837_v41  ;;  %v904_v48 = vpop.permute.xlu1 %903 }
 0xa03   : > { %3114 = vmatmul.mubr.msk.bf16.vlgmr.msra.gmra.mrb[8].mxu0 %vm463_vm4, %v838_v42 }
 0xa04   : > { %3121 = vmatprep.mubr.msk.bf16.mxu0 %vm399_vm3, %v902_v43 }
 0xa05   : > { %3118 = vmatpush3.bf16.xpose.msra.mxu0 %v916_v44 }
 0xa06   : > { %3292 = vmatprep.subr.msk.bf16.mxu0 %vm399_vm3, %v908_v45 }
 0xa0d   : > { %3120 = vmatpush3.bf16.xpose.msra.mxu0 %v919_v47 }
 0xa14   : > { %3122 = vmatmul.mubr.msk.bf16.vlgmr.msra.gmra.mrb[12].mxu0 %vm399_vm3, %v904_v48 }
 0xad6   : > { %v3115_v49 = vpop.f32.mrb[8].mxu0 }
 0xad7   : > { %v887_v50 = vpop.f32.mrb[9].mxu0 }
 0xad8   : > { %v3116_v51 = vpop.f32.mrb[10].mxu0 }
 0xad9   : > { %v890_v52 = vpop.f32.mrb[11].mxu0 }
 0xada   : > { %v3363_v53 = vpack.i.bf16 %v890_v52, %v887_v50 }
 0xae7   : > { %v3123_v56 = vpop.f32.mrb[12].mxu0 }
 0xae8   : > { %v955_v59 = vpop.f32.mrb[13].mxu0  ;;  %v971_v1 = vmul.f32 0.35355338, %v3123_v56 }
 0xae9   : > { %v969_v60 = vmul.f32 0.35355338, %v955_v59  ;;  %v3124_v61 = vpop.f32.mrb[14].mxu0 }
 0xaea   : > { %v958_v62 = vpop.f32.mrb[15].mxu0  ;;  %v978_v7 = vsel %vm470_vm5, %v971_v1, -inf }
 0xaeb   : > { %v970_v3 = vmul.f32 0.35355338, %v958_v62  ;;  %v972_v5 = vsel %vm463_vm4, %v969_v60, -inf }
 0xaec   : > { %973 = vmax.xlane.f32.xlu0 %v972_v5 }
 0xaed   : > { %v975_v6 = vsel %vm463_vm4, %v970_v3, -inf }
 0xaee   : > { %976 = vmax.xlane.f32.xlu1 %v975_v6 }
 0xaf0   : > { %979 = vmax.xlane.f32.xlu0 %v978_v7 }
 0xb79   : > { %v974_v9 = vpop.xlane.xlu0 %973 }
 0xb7a   : > { %v981_v10 = vsub.f32 %v969_v60, %v974_v9 }
 0xb7b   : > { %v977_v12 = vpop.xlane.xlu1 %976 }
 0xb7c   : > { %v984_v13 = vmul.f32 1.442695, %v981_v10  ;;  %v982_v15 = vsub.f32 %v970_v3, %v977_v12 }
 0xb7d   : > { %v980_v16 = vpop.xlane.xlu0 %979 }
 0xb7e   : > { %3463 = vpow2.f32 %v984_v13  ;;  %v986_v17 = vmul.f32 1.442695, %v982_v15  ;;  %v983_v19 = vsub.f32 %v971_v1, %v980_v16 }
 0xb80   : > { %3465 = vpow2.f32 %v986_v17  ;;  %v988_v20 = vmul.f32 1.442695, %v983_v19 }
 0xb82   : > { %3467 = vpow2.f32 %v988_v20 }
 0xb88   : > { %v3464_v21 = vpop.eup %3463 }
 0xb89   : > { %v990_v22 = vsel %vm463_vm4, %v3464_v21, 0.0 }
 0xb8a   : > { %v3466_v23 = vpop.eup %3465  ;;  %991 = vadd.xlane.f32.xlu0 %v990_v22 }
 0xb8b   : > { %v993_v26 = vsel %vm463_vm4, %v3466_v23, 0.0 }
 0xb8c   : > { %v3468_v24 = vpop.eup %3467 }
 0xb8d   : > { %v996_v25 = vsel %vm470_vm5, %v3468_v24, 0.0 }
 0xb8e   : > { %997 = vadd.xlane.f32.xlu1 %v996_v25  ;;  %994 = vadd.xlane.f32.xlu0 %v993_v26 }
 0xb9f   : > { %1009 = vrot.lane.b32.xlu1 %v3763_v4, %s4327_s25 }
 0xba3   : > { %3359 = vrot.lane.b32.xlu1 %v3358_v58, %s4325_s26 }
 0xba4   : > { %1007 = vrot.lane.b32.xlu0 %v3767_v8, %s4327_s25  ;;  %s161_s25 = sand.u32 1, %s3609_s13  }
 0xba5   : > { %s2764_s16 = scalar_lea.sflag [#allocation3], %s161_s25 }
 0xba7   : > { %1076 = vrot.lane.b32.xlu1 %v3841_v54, %s4325_s26 }
 0xba8   : > { %3364 = vrot.lane.b32.xlu0 %v3363_v53, %s4323_s27 }
 0xbab   : > { %1088 = vrot.lane.b32.xlu1 %v3115_v49, %s4323_s27 }
 0xc17   : > { %v992_v27 = vpop.xlane.xlu0 %991 }
 0xc18   : > { %3469 = vrcp.f32 %v992_v27 }
 0xc1b   : > { %v995_v4 = vpop.xlane.xlu0 %994  ;;  %v998_v28 = vpop.xlane.xlu1 %997 }
 0xc1c   : > { %3471 = vrcp.f32 %v995_v4 }
 0xc1d   : > { %3473 = vrcp.f32 %v998_v28 }
 0xc1f   : > { %v1008_v29 = vpop.permute.xlu0 %1007  ;;  %v1010_v55 = vpop.permute.xlu1 %1009 }
 0xc20   : > { %v1019_v57 = vand.u32 %v1010_v55, %v3797_v46  ;;  %3125 = vmatprep.subr.bf16.mxu1 %v1008_v29 }
 0xc21   : > { %3126 = vmatpush3.bf16.msra.mxu1 %v1008_v29 }
 0xc22   : > { %3127 = vmatprep.subr.bf16.mxu1 %v1019_v57  ;;  %v3470_v8 = vpop.eup %3469 }
 0xc23   : > { %v1002_v30 = vmul.f32 %v3470_v8, %v3464_v21  ;;  %v3360_v42 = vpop.permute.xlu1 %3359  ;;  %v3365_v44 = vpop.permute.xlu0 %3364 }
 0xc24   : > { %v3362_v45 = vunpack.i.h.bf16 %v3360_v42  ;;  %v3361_v47 = vunpack.i.l.bf16 %v3360_v42  ;;  %v3367_v49 = vunpack.i.h.bf16 %v3365_v44  ;;  %v3366_v50 = vunpack.i.l.bf16 %v3365_v44  ;;  %v2869_v44 = vld [vmem:[%s4319_s2 + $0x38] ss:$0 sm:$0xff] }
 0xc25   : > { %3128 = vmatpush3.bf16.msra.mxu1 %v1019_v57 }
 0xc26   : > { %v3472_v54 = vpop.eup %3471  ;;  %3133 = vmatprep.subr.bf16.mxu1 %v3393_v35  ;;  %v1106_v51 = vsel %vm399_vm3, %v3812_v2, %v3362_v45  ;;  %v1105_v52 = vsel %vm399_vm3, %v3810_v0, %v3361_v47 }
 0xc27   : > { %v3474_v58 = vpop.eup %3473  ;;  %v1003_v31 = vmul.f32 %v3472_v54, %v3466_v23  ;;  %v1077_v43 = vpop.permute.xlu1 %1076  ;;  %v1109_v3 = vsel %vm1108_vm7, %v1105_v52, %v3366_v50  ;;  %v1110_v2 = vsel %vm1108_vm7, %v1106_v51, %v3367_v49  ;;  %v2870_v51 = vld [vmem:[%s4319_s2 + $0x40] ss:$0 sm:$0xff] }
 0xc28   : > { %v1004_v32 = vmul.f32 %v3474_v58, %v3468_v24  ;;  %v1107_v56 = vsel %vm399_vm3, %v3808_v63, %v1077_v43  ;;  %v2864_v63 = vld [vmem:[%s4319_s2 + $0x30] ss:$0 sm:$0xff] }
 0xc29   : > { %v1005_v33 = vpack.c.bf16 %v1003_v31, %v1002_v30  ;;  %v3395_v31 = vld [vmem:[%s4318_s1 + $0x38] sm:$0xff]  }
 0xc2a   : > { %v1006_v34 = vpack.c.bf16 %v1004_v32, %v1004_v32  ;;  %v3396_v32 = vld [vmem:[%s4318_s1 + $0x40] sm:$0xff]   ;;  %3141 = vmatprep.subr.bf16.mxu0 %v3395_v31 }
 0xc2b   : > { %3129 = vmatprep.mubr.msk.bf16.mxu1 %vm463_vm4, %v1005_v33  ;;  %v1089_v48 = vpop.permute.xlu1 %1088  ;;  %3142 = vmatpush3.bf16.msra.mxu0 %v3395_v31 }
 0xc2c   : > { %3130 = vmatmul.mubr.msk.bf16.vlgmr.msra.gmra.mrb[20].mxu1 %vm463_vm4, %v1006_v34  ;;  %v1111_v60 = vsel %vm1108_vm7, %v1107_v56, %v1089_v48  ;;  %3143 = vmatprep.subr.bf16.mxu0 %v3396_v32 }
 0xc2d   : > { %3134 = vmatpush3.bf16.msra.mxu1 %v3393_v35 }
 0xc2e   : > { %3135 = vmatprep.subr.bf16.mxu1 %v3394_v36 }
 0xc2f   : > { %3144 = vmatpush3.bf16.msra.mxu0 %v3396_v32 }
 0xc31   : > { %3136 = vmatpush3.bf16.msra.mxu1 %v3394_v36 }
 0xcff   : > { %v3131_v37 = vpop.f32.mrb[20].mxu1 }
 0xd00   : > { %1100 = vrot.lane.b32.xlu1 %v3131_v37, %s4321_s5  ;;  %v1055_v38 = vpop.f32.mrb[21].mxu1 }
 0xd01   : > { %v3132_v39 = vpop.f32.mrb[22].mxu1 }
 0xd02   : > { %v1058_v40 = vpop.f32.mrb[23].mxu1 }
 0xd03   : > { %v3368_v41 = vpack.i.bf16 %v1058_v40, %v1055_v38 }
 0xd05   : > { %3369 = vrot.lane.b32.xlu0 %v3368_v41, %s4321_s5  ;;  %s162_s5 = scalar_lea.vmem [#allocation2], %s161_s25 }
 0xd06   : > { %s2776_s28 = sshll.u32 %s162_s5, 4  ;;  %s4277_s28 = int_to_ptr.vmem [resolvable:$true] %s2776_s28 }
 0xd72   : > { %v1101_v53 = vpop.permute.xlu1 %1100 }
 0xd73   : > { %v1115_v1 = vsel %vm1112_vm8, %v1111_v60, %v1101_v53 }
 0xd74   : > { %v1117_v7 = vpack.c.bf16 %v1115_v1, %v1115_v1  ;;  %v3397_v1 = vld [vmem:[%s4318_s1 + $0x48] sm:$0xff]  }
 0xd75   : > { %3149 = vmatprep.subr.bf16.mxu1 %v3397_v1 }
 0xd77   : > { %v3370_v59 = vpop.permute.xlu0 %3369 }
 0xd78   : > { %v3372_v61 = vunpack.i.h.bf16 %v3370_v59  ;;  %v3371_v62 = vunpack.i.l.bf16 %v3370_v59 }
 0xd7a   : > { %v1113_v5 = vsel %vm1112_vm8, %v1109_v3, %v3371_v62  ;;  %v1114_v0 = vsel %vm1112_vm8, %v1110_v2, %v3372_v61  ;;  %v3398_v3 = vld [vmem:[%s4318_s1 + $0x50] sm:$0xff]   ;;  %v3399_v2 = vld [vmem:[%s4318_s1 + $0x58] sm:$0xff]  }
 0xd7b   : > { %v1116_v6 = vpack.c.bf16 %v1114_v0, %v1113_v5  ;;  %v3400_v5 = vld [vmem:[%s4318_s1 + $0x60] sm:$0xff]   ;;  %v3401_v0 = vld [vmem:[%s4318_s1 + $0x68] sm:$0xff]  }
 0xd7d   : > { %3137 = vmatprep.mubr.msk.bf16.mxu1 %vm258_vm2, %v1116_v6  ;;  %v3402_v6 = vld [vmem:[%s4318_s1 + $0x70] sm:$0xff]  }
 0xd7e   : > { %3138 = vmatmul.mubr.msk.bf16.vlgmr.msra.gmra.mrb[24].mxu1 %vm258_vm2, %v1117_v7  ;;  %v3403_v7 = vld [vmem:[%s4318_s1 + $0x78] sm:$0xff]  }
 0xd7f   : > { %3150 = vmatpush3.bf16.msra.mxu1 %v3397_v1 }
 0xd80   : > { %3151 = vmatprep.subr.bf16.mxu1 %v3398_v3 }
 0xd83   : > { %3152 = vmatpush3.bf16.msra.mxu1 %v3398_v3 }
 0xd84   : > { %3153 = vmatprep.subr.bf16.mxu1 %v3399_v2 }
 0xd87   : > { %3154 = vmatpush3.bf16.msra.mxu1 %v3399_v2 }
 0xd88   : > { %3155 = vmatprep.subr.bf16.mxu1 %v3400_v5 }
 0xd8b   : > { %3156 = vmatpush3.bf16.msra.mxu1 %v3400_v5 }
 0xd8c   : > { %3157 = vmatprep.subr.bf16.mxu1 %v3401_v0 }
 0xd8f   : > { %3158 = vmatpush3.bf16.msra.mxu1 %v3401_v0 }
 0xd90   : > { %3159 = vmatprep.subr.bf16.mxu1 %v3402_v6 }
 0xd93   : > { %3160 = vmatpush3.bf16.msra.mxu1 %v3402_v6 }
 0xd94   : > { %3161 = vmatprep.subr.bf16.mxu1 %v3403_v7 }
 0xd97   : > { %3162 = vmatpush3.bf16.msra.mxu1 %v3403_v7 }
 0xe51   : > { %v3139_v9 = vpop.f32.mrb[24].mxu1 }
 0xe52   : > { %v1179_v10 = vpop.f32.mrb[25].mxu1  ;;  %v1188_v12 = vadd.f32 %v3139_v9, %v2864_v63  ;;  %v2871_v9 = vld [vmem:[%s4319_s2 + $0x48] ss:$0 sm:$0xff] }
 0xe53   : > { %v1180_v13 = vadd.f32 %v2864_v63, %v1179_v10  ;;  %v3140_v15 = vpop.f32.mrb[26].mxu1 }
 0xe54   : > { %v1182_v16 = vpop.f32.mrb[27].mxu1  ;;  %v3926_v20 = vadd.f32 %v1188_v12, %v3725_v11 }
 0xe55   : > { %v3923_v17 = vadd.f32 %v1180_v13, %v3730_v14  ;;  %v1183_v19 = vadd.f32 %v2864_v63, %v1182_v16  ;;  %v3404_v63 = vld [vmem:[%s4318_s1 + $0x80] sm:$0xff]  }
 0xe56   : > { %v1204_v24 = vsel %vm265_vm1, %v3926_v20, 0.0  ;;  %3163 = vmatprep.subr.bf16.mxu1 %v3404_v63 }
 0xe57   : > { %v3929_v21 = vadd.f32 %v1183_v19, %v3734_v18  ;;  %v1198_v22 = vsel %vm258_vm2, %v3923_v17, 0.0  ;;  %3164 = vmatpush3.bf16.msra.mxu1 %v3404_v63 }
 0xe58   : > { %1199 = vadd.xlane.f32.xlu0 %v1198_v22 }
 0xe59   : > { %v1201_v23 = vsel %vm258_vm2, %v3929_v21, 0.0 }
 0xe5a   : > { %1202 = vadd.xlane.f32.xlu1 %v1201_v23 }
 0xe5c   : > { %1205 = vadd.xlane.f32.xlu0 %v1204_v24 }
 0xee5   : > { %v1200_v14 = vpop.xlane.xlu0 %1199 }
 0xee6   : > { %v1207_v25 = vmul.f32 0.03125, %v1200_v14 }
 0xee7   : > { %v1203_v26 = vpop.xlane.xlu1 %1202 }
 0xee8   : > { %v1210_v11 = vsub.f32 %v3923_v17, %v1207_v25  ;;  %v1208_v27 = vmul.f32 0.03125, %v1203_v26 }
 0xee9   : > { %v1206_v18 = vpop.xlane.xlu0 %1205 }
 0xeea   : > { %v1211_v4 = vsub.f32 %v3929_v21, %v1208_v27  ;;  %v1209_v28 = vmul.f32 0.03125, %v1206_v18  ;;  %v1213_v29 = vmul.f32 %v1210_v11, %v1210_v11 }
 0xeec   : > { %v1212_v55 = vsub.f32 %v3926_v20, %v1209_v28  ;;  %v1216_v57 = vsel %vm258_vm2, %v1213_v29, 0.0  ;;  %v1214_v8 = vmul.f32 %v1211_v4, %v1211_v4 }
 0xeed   : > { %1217 = vadd.xlane.f32.xlu0 %v1216_v57 }
 0xeee   : > { %v1215_v54 = vmul.f32 %v1212_v55, %v1212_v55  ;;  %v1219_v58 = vsel %vm258_vm2, %v1214_v8, 0.0 }
 0xef0   : > { %v1222_v30 = vsel %vm265_vm1, %v1215_v54, 0.0 }
 0xef1   : > { %1220 = vadd.xlane.f32.xlu0 %v1219_v58  ;;  %1223 = vadd.xlane.f32.xlu1 %v1222_v30 }
 0xf7a   : > { %v1218_v33 = vpop.xlane.xlu0 %1217 }
 0xf7b   : > { %v1225_v34 = vmul.f32 0.03125, %v1218_v33 }
 0xf7d   : > { %v1228_v35 = vadd.f32 1e-12, %v1225_v34 }
 0xf7e   : > { %v1224_v36 = vpop.xlane.xlu1 %1223  ;;  %v1221_v37 = vpop.xlane.xlu0 %1220 }
 0xf7f   : > { %3475 = vrsqrt.f32 %v1228_v35  ;;  %v1227_v38 = vmul.f32 0.03125, %v1224_v36  ;;  %v1226_v39 = vmul.f32 0.03125, %v1221_v37 }
 0xf81   : > { %v1230_v40 = vadd.f32 1e-12, %v1227_v38  ;;  %v1229_v41 = vadd.f32 1e-12, %v1226_v39 }
 0xf83   : > { %3477 = vrsqrt.f32 %v1230_v40 }
 0xf84   : > { %3479 = vrsqrt.f32 %v1229_v41 }
 0xf89   : > { %v3476_v42 = vpop.eup %3475 }
 0xf8a   : > { %v1234_v43 = vmul.f32 %v3476_v42, %v1210_v11 }
 0xf8c   : > { %v1241_v50 = vmul.f32 %v2869_v44, %v1234_v43  ;;  %v2876_v43 = vld [vmem:[%s4319_s2 + $0x50] ss:$0 sm:$0xff] }
 0xf8d   : > { %v3478_v45 = vpop.eup %3477 }
 0xf8e   : > { %v3480_v47 = vpop.eup %3479  ;;  %v1236_v48 = vmul.f32 %v3478_v45, %v1212_v55  ;;  %v1248_v59 = vadd.f32 %v2870_v51, %v1241_v50 }
 0xf8f   : > { %v1235_v49 = vmul.f32 %v3480_v47, %v1211_v4 }
 0xf90   : > { %v1243_v52 = vmul.f32 %v2869_v44, %v1236_v48 }
 0xf91   : > { %v1242_v53 = vmul.f32 %v2869_v44, %v1235_v49 }
 0xf92   : > { %v1250_v56 = vadd.f32 %v2870_v51, %v1243_v52 }
 0xf93   : > { %v1249_v60 = vadd.f32 %v2870_v51, %v1242_v53 }
 0xf94   : > { %v1252_v61 = vpack.c.bf16 %v1250_v56, %v1250_v56 }
 0xf95   : > { %v1251_v62 = vpack.c.bf16 %v1249_v60, %v1248_v59 }
 0xf97   : > { %3145 = vmatprep.mubr.msk.bf16.mxu0 %vm258_vm2, %v1251_v62 }
 0xf98   : > { %3146 = vmatmul.mubr.msk.bf16.vlgmr.msra.gmra.mrb[16].mxu0 %vm258_vm2, %v1252_v61 }
0x106b   : > { %v3147_v10 = vpop.f32.mrb[16].mxu0 }
0x106c   : > { %v1323_v12 = vadd.f32 %v3147_v10, %v2871_v9  ;;  %v1314_v13 = vpop.f32.mrb[17].mxu0 }
0x106d   : > { %v1315_v15 = vadd.f32 %v2871_v9, %v1314_v13  ;;  %v3148_v16 = vpop.f32.mrb[18].mxu0  ;;  %v3405_v13 = vld [vmem:[%s4318_s1 + $0x88] sm:$0xff]  }
0x106e   : > { %v1330_v19 = vmul.f32 %v1323_v12, %v1323_v12  ;;  %v1317_v22 = vpop.f32.mrb[19].mxu0  ;;  %3169 = vmatprep.subr.bf16.mxu0 %v3405_v13 }
0x106f   : > { %v1328_v23 = vmul.f32 %v1315_v15, %v1315_v15  ;;  %v1318_v24 = vadd.f32 %v2871_v9, %v1317_v22  ;;  %3170 = vmatpush3.bf16.msra.mxu0 %v3405_v13 }
0x1070   : > { %v1333_v14 = vmul.f32 %v1330_v19, %v1323_v12 }
0x1071   : > { %v1331_v25 = vmul.f32 %v1328_v23, %v1315_v15  ;;  %v1329_v26 = vmul.f32 %v1318_v24, %v1318_v24 }
0x1072   : > { %v1336_v11 = vmul.f32 0.044715, %v1333_v14 }
0x1073   : > { %v1334_v27 = vmul.f32 0.044715, %v1331_v25  ;;  %v1332_v18 = vmul.f32 %v1329_v26, %v1318_v24 }
0x1074   : > { %v1339_v4 = vadd.f32 %v1336_v11, %v1323_v12 }
0x1075   : > { %v1337_v28 = vadd.f32 %v1334_v27, %v1315_v15  ;;  %v1335_v29 = vmul.f32 0.044715, %v1332_v18  ;;  %v2885_v18 = vld [vmem:[%s4319_s2 + $0x58] ss:$0 sm:$0xff] }
0x1076   : > { %v1342_v55 = vmul.f32 0.7978846, %v1339_v4 }
0x1077   : > { %v1340_v57 = vmul.f32 0.7978846, %v1337_v28  ;;  %v1338_v8 = vadd.f32 %v1335_v29, %v1318_v24 }
0x1078   : > { %3481 = vtanh.f32 %v1342_v55 }
0x1079   : > { %3483 = vtanh.f32 %v1340_v57  ;;  %v1341_v54 = vmul.f32 0.7978846, %v1338_v8  ;;  %v2886_v8 = vld [vmem:[%s4319_s2 + $0x60] ss:$0 sm:$0xff] }
0x107b   : > { %3485 = vtanh.f32 %v1341_v54 }
0x1082   : > { %v3482_v58 = vpop.eup %3481 }
0x1083   : > { %v3484_v30 = vpop.eup %3483  ;;  %v1348_v31 = vadd.f32 1.0, %v3482_v58 }
0x1084   : > { %v1346_v32 = vadd.f32 1.0, %v3484_v30 }
0x1085   : > { %v3486_v33 = vpop.eup %3485  ;;  %v1351_v34 = vmul.f32 0.5, %v1348_v31 }
0x1086   : > { %v1347_v35 = vadd.f32 1.0, %v3486_v33  ;;  %v1349_v36 = vmul.f32 0.5, %v1346_v32 }
0x1087   : > { %v1354_v38 = vmul.f32 %v1351_v34, %v1323_v12 }
0x1088   : > { %v1350_v37 = vmul.f32 0.5, %v1347_v35  ;;  %v1352_v39 = vmul.f32 %v1349_v36, %v1315_v15  ;;  %v3406_v15 = vld [vmem:[%s4318_s1 + $0x90] sm:$0xff]   ;;  %v2887_v36 = vld [vmem:[%s4319_s2 + $0x68] ss:$0 sm:$0xff] }
0x1089   : > { %v1356_v42 = vpack.c.bf16 %v1354_v38, %v1354_v38  ;;  %3171 = vmatprep.subr.bf16.mxu0 %v3406_v15 }
0x108a   : > { %v1353_v40 = vmul.f32 %v1350_v37, %v1318_v24  ;;  %3172 = vmatpush3.bf16.msra.mxu0 %v3406_v15 }
0x108c   : > { %v1355_v41 = vpack.c.bf16 %v1353_v40, %v1352_v39 }
0x108e   : > { %3165 = vmatprep.mubr.bf16.mxu1 %v1355_v41 }
0x108f   : > { %3166 = vmatmul.mubr.bf16.vlgmr.msra.gmra.mrb[28].mxu1 %v1356_v42 }
0x1162   : > { %v3167_v44 = vpop.f32.mrb[28].mxu1 }
0x1163   : > { %v1460_v45 = vpop.f32.mrb[29].mxu1  ;;  %v1469_v47 = vadd.f32 %v3167_v44, %v2876_v43 }
0x1164   : > { %v1461_v48 = vadd.f32 %v2876_v43, %v1460_v45  ;;  %v3168_v49 = vpop.f32.mrb[30].mxu1 }
0x1165   : > { %v1463_v50 = vpop.f32.mrb[31].mxu1  ;;  %v3991_v53 = vadd.f32 %v1469_v47, %v3926_v20 }
0x1166   : > { %v3988_v51 = vadd.f32 %v1461_v48, %v3923_v17  ;;  %v1464_v52 = vadd.f32 %v2876_v43, %v1463_v50 }
0x1167   : > { %v1485_v61 = vsel %vm265_vm1, %v3991_v53, 0.0 }
0x1168   : > { %v3994_v56 = vadd.f32 %v1464_v52, %v3929_v21  ;;  %v1479_v59 = vsel %vm258_vm2, %v3988_v51, 0.0 }
0x1169   : > { %1480 = vadd.xlane.f32.xlu0 %v1479_v59 }
0x116a   : > { %v1482_v60 = vsel %vm258_vm2, %v3994_v56, 0.0 }
0x116b   : > { %1483 = vadd.xlane.f32.xlu1 %v1482_v60 }
0x116d   : > { %1486 = vadd.xlane.f32.xlu0 %v1485_v61 }
0x11f6   : > { %v1481_v17 = vpop.xlane.xlu0 %1480 }
0x11f7   : > { %v1488_v62 = vmul.f32 0.03125, %v1481_v17 }
0x11f8   : > { %v1484_v1 = vpop.xlane.xlu1 %1483 }
0x11f9   : > { %v1491_v20 = vsub.f32 %v3988_v51, %v1488_v62  ;;  %v1489_v3 = vmul.f32 0.03125, %v1484_v1 }
0x11fa   : > { %v1487_v21 = vpop.xlane.xlu0 %1486 }
0x11fb   : > { %v1492_v2 = vsub.f32 %v3994_v56, %v1489_v3  ;;  %v1490_v5 = vmul.f32 0.03125, %v1487_v21  ;;  %v1494_v0 = vmul.f32 %v1491_v20, %v1491_v20 }
0x11fd   : > { %v1493_v6 = vsub.f32 %v3991_v53, %v1490_v5  ;;  %v1497_v7 = vsel %vm258_vm2, %v1494_v0, 0.0  ;;  %v1495_v63 = vmul.f32 %v1492_v2, %v1492_v2 }
0x11fe   : > { %1498 = vadd.xlane.f32.xlu1 %v1497_v7 }
0x11ff   : > { %v1500_v9 = vsel %vm258_vm2, %v1495_v63, 0.0  ;;  %v1496_v10 = vmul.f32 %v1493_v6, %v1493_v6 }
0x1200   : > { %1501 = vadd.xlane.f32.xlu0 %v1500_v9 }
0x1201   : > { %v1503_v12 = vsel %vm265_vm1, %v1496_v10, 0.0 }
0x1202   : > { %1504 = vadd.xlane.f32.xlu1 %v1503_v12 }
0x128b   : > { %v1499_v16 = vpop.xlane.xlu1 %1498 }
0x128c   : > { %v1506_v19 = vmul.f32 0.03125, %v1499_v16 }
0x128d   : > { %v1502_v22 = vpop.xlane.xlu0 %1501 }
0x128e   : > { %v1509_v23 = vadd.f32 1e-12, %v1506_v19  ;;  %v1507_v24 = vmul.f32 0.03125, %v1502_v22 }
0x128f   : > { %v1505_v14 = vpop.xlane.xlu1 %1504 }
0x1290   : > { %3487 = vrsqrt.f32 %v1509_v23  ;;  %v1510_v25 = vadd.f32 1e-12, %v1507_v24  ;;  %v1508_v26 = vmul.f32 0.03125, %v1505_v14 }
0x1292   : > { %3489 = vrsqrt.f32 %v1510_v25  ;;  %v1511_v11 = vadd.f32 1e-12, %v1508_v26 }
0x1294   : > { %3491 = vrsqrt.f32 %v1511_v11 }
0x129a   : > { %v3488_v27 = vpop.eup %3487 }
0x129b   : > { %v1515_v4 = vmul.f32 %v3488_v27, %v1491_v20 }
0x129c   : > { %v3490_v28 = vpop.eup %3489 }
0x129d   : > { %v1516_v29 = vmul.f32 %v3490_v28, %v1492_v2  ;;  %v1522_v55 = vmul.f32 %v2885_v18, %v1515_v4 }
0x129e   : > { %v3492_v57 = vpop.eup %3491 }
0x129f   : > { %v1517_v54 = vmul.f32 %v3492_v57, %v1493_v6  ;;  %v1523_v58 = vmul.f32 %v2885_v18, %v1516_v29  ;;  %v1529_v30 = vadd.f32 %v2886_v8, %v1522_v55 }
0x12a1   : > { %v1530_v31 = vadd.f32 %v2886_v8, %v1523_v58  ;;  %v1524_v32 = vmul.f32 %v2885_v18, %v1517_v54 }
0x12a3   : > { %v1532_v33 = vpack.c.bf16 %v1530_v31, %v1529_v30  ;;  %v1531_v34 = vadd.f32 %v2886_v8, %v1524_v32 }
0x12a5   : > { %3173 = vmatprep.mubr.msk.bf16.mxu0 %vm258_vm2, %v1532_v33  ;;  %v1533_v35 = vpack.c.bf16 %v1531_v34, %v1531_v34 }
0x12a7   : > { %3174 = vmatmul.mubr.msk.bf16.vlgmr.msra.gmra.mrb[20].mxu0 %vm258_vm2, %v1533_v35 }
0x137a   : > { %v3175_v37 = vpop.f32.mrb[20].mxu0 }
0x137b   : > { %v1604_v38 = vadd.f32 %v3175_v37, %v2887_v36  ;;  %v1595_v39 = vpop.f32.mrb[21].mxu0 }
0x137c   : > { %v3176_v40 = vpop.f32.mrb[22].mxu0  ;;  %v1596_v43 = vadd.f32 %v2887_v36, %v1595_v39 }
0x137d   : > { %v4025_v41 = vpack.c.bf16 %v1604_v38, %v1604_v38  ;;  %v1598_v42 = vpop.f32.mrb[23].mxu0 }
0x137e   : > { %v1599_v44 = vadd.f32 %v2887_v36, %v1598_v42 }
0x137f   : > { %1615 = vrot.lane.b32.xlu1 %v4025_v41, %s3619_s6 }
0x1380   : > { %v4029_v45 = vpack.c.bf16 %v1599_v44, %v1596_v43 }
0x1382   : > { %1613 = vrot.lane.b32.xlu0 %v4029_v45, %s3619_s6  ;;  %3181 = vmatprep.mubr.msk.bf16.mxu0 %vm399_vm3, %v4029_v45  ;;  %s4331_s6 = smov 40  }
0x1383   : > { %1781 = vrot.lane.b32.xlu1 %v4029_v45, %s3622_s9 }
0x1386   : > { %1777 = vrot.lane.b32.xlu0 %v4029_v45, %s3621_s8 }
0x1387   : > { %1783 = vrot.lane.b32.xlu1 %v4025_v41, %s3622_s9 }
0x138b   : > { %1779 = vrot.lane.b32.xlu1 %v4025_v41, %s3621_s8  ;;  %s4333_s8 = smov 16  }
0x13f1   : > { %v1616_v47 = vpop.permute.xlu1 %1615 }
0x13f2   : > { %v1627_v61 = vsel %vm399_vm3, %v1616_v47, 0 }
0x13f4   : > { %v1614_v48 = vpop.permute.xlu0 %1613 }
0x13f5   : > { %v1624_v49 = vsel %vm399_vm3, %v1614_v48, 0  ;;  %v1782_v50 = vpop.permute.xlu1 %1781  ;;  %3293 = vmatprep.subr.msk.bf16.mxu0 %vm399_vm3, %v1614_v48 }
0x13f6   : > { %v1792_v52 = vsel %vm399_vm3, %v1782_v50, 0  ;;  %3178 = vmatpush3.bf16.xpose.msra.mxu0 %v1624_v49  ;;  %3295 = vmatprep.subr.msk.bf16.mxu1 %vm399_vm3, %v1782_v50 }
0x13f7   : > { %3294 = vmatprep.subr.msk.bf16.mxu0 %vm399_vm3, %v1616_v47  ;;  %3194 = vmatpush3.bf16.xpose.msra.mxu1 %v1792_v52 }
0x13f8   : > { %v1778_v59 = vpop.permute.xlu0 %1777 }
0x13f9   : > { %v1784_v60 = vpop.permute.xlu1 %1783  ;;  %3197 = vmatprep.mubr.msk.bf16.mxu1 %vm399_vm3, %v1778_v59 }
0x13fa   : > { %3296 = vmatprep.subr.msk.bf16.mxu1 %vm399_vm3, %v1784_v60  ;;  %v1795_v17 = vsel %vm399_vm3, %v1784_v60, 0 }
0x13fd   : > { %v1780_v62 = vpop.permute.xlu1 %1779 }
0x13fe   : > { %3180 = vmatpush3.bf16.xpose.msra.mxu0 %v1627_v61 }
0x13ff   : > { %3196 = vmatpush3.bf16.xpose.msra.mxu1 %v1795_v17 }
0x1405   : > { %3182 = vmatmul.mubr.msk.bf16.vlgmr.msra.gmra.mrb[24].mxu0 %vm399_vm3, %v4025_v41 }
0x1406   : > { %3198 = vmatmul.mubr.msk.bf16.vlgmr.msra.gmra.mrb[32].mxu1 %vm399_vm3, %v1780_v62 }
0x14d8   : > { %v3183_v1 = vpop.f32.mrb[24].mxu0 }
0x14d9   : > { %v1663_v20 = vpop.f32.mrb[25].mxu0  ;;  %v3199_v3 = vpop.f32.mrb[32].mxu1  ;;  %v1679_v7 = vmul.f32 0.35355338, %v3183_v1 }
0x14da   : > { %v1677_v21 = vmul.f32 0.35355338, %v1663_v20  ;;  %v3184_v2 = vpop.f32.mrb[26].mxu0  ;;  %v1831_v5 = vpop.f32.mrb[33].mxu1  ;;  %v1847_v12 = vmul.f32 0.35355338, %v3199_v3 }
0x14db   : > { %v1666_v0 = vpop.f32.mrb[27].mxu0  ;;  %v3200_v6 = vpop.f32.mrb[34].mxu1  ;;  %v1845_v15 = vmul.f32 0.35355338, %v1831_v5  ;;  %v1686_v16 = vsel %vm470_vm5, %v1679_v7, -inf }
0x14dc   : > { %v1678_v63 = vmul.f32 0.35355338, %v1666_v0  ;;  %v1834_v9 = vpop.f32.mrb[35].mxu1  ;;  %v1680_v10 = vsel %vm463_vm4, %v1677_v21, -inf  ;;  %v1854_v19 = vsel %vm470_vm5, %v1847_v12, -inf }
0x14dd   : > { %1681 = vmax.xlane.f32.xlu0 %v1680_v10  ;;  %v1846_v22 = vmul.f32 0.35355338, %v1834_v9  ;;  %v1848_v23 = vsel %vm463_vm4, %v1845_v15, -inf }
0x14de   : > { %v1683_v13 = vsel %vm463_vm4, %v1678_v63, -inf }
0x14df   : > { %1684 = vmax.xlane.f32.xlu1 %v1683_v13  ;;  %v1851_v24 = vsel %vm463_vm4, %v1846_v22, -inf }
0x14e1   : > { %1687 = vmax.xlane.f32.xlu0 %v1686_v16 }
0x14e3   : > { %1855 = vmax.xlane.f32.xlu1 %v1854_v19 }
0x14e5   : > { %1849 = vmax.xlane.f32.xlu0 %v1848_v23 }
0x14e9   : > { %1852 = vmax.xlane.f32.xlu0 %v1851_v24 }
0x156a   : > { %v1682_v14 = vpop.xlane.xlu0 %1681 }
0x156b   : > { %v1689_v25 = vsub.f32 %v1677_v21, %v1682_v14 }
0x156c   : > { %v1685_v26 = vpop.xlane.xlu1 %1684 }
0x156d   : > { %v1692_v18 = vmul.f32 1.442695, %v1689_v25  ;;  %v1690_v37 = vsub.f32 %v1678_v63, %v1685_v26 }
0x156e   : > { %v1688_v11 = vpop.xlane.xlu0 %1687 }
0x156f   : > { %v1691_v27 = vsub.f32 %v1679_v7, %v1688_v11  ;;  %v1694_v39 = vmul.f32 1.442695, %v1690_v37 }
0x1570   : > { %v1856_v4 = vpop.xlane.xlu1 %1855 }
0x1571   : > { %v1696_v28 = vmul.f32 1.442695, %v1691_v27  ;;  %v1859_v29 = vsub.f32 %v1847_v12, %v1856_v4 }
0x1572   : > { %v1850_v32 = vpop.xlane.xlu0 %1849 }
0x1573   : > { %3493 = vpow2.f32 %v1696_v28  ;;  %v1864_v55 = vmul.f32 1.442695, %v1859_v29  ;;  %v1857_v35 = vsub.f32 %v1845_v15, %v1850_v32 }
0x1574   : > { %3495 = vpow2.f32 %v1692_v18 }
0x1575   : > { %3497 = vpow2.f32 %v1864_v55  ;;  %v1860_v38 = vmul.f32 1.442695, %v1857_v35 }
0x1576   : > { %v1853_v33 = vpop.xlane.xlu0 %1852 }
0x1577   : > { %v1858_v34 = vsub.f32 %v1846_v22, %v1853_v33 }
0x1579   : > { %v1862_v36 = vmul.f32 1.442695, %v1858_v34 }
0x157b   : > { %3499 = vpow2.f32 %v1862_v36 }
0x157c   : > { %3501 = vpow2.f32 %v1860_v38 }
0x157d   : > { %v4061_v57 = vpop.eup %3493  ;;  %3503 = vpow2.f32 %v1694_v39 }
0x157e   : > { %v4063_v8 = vpop.eup %3495  ;;  %v1704_v54 = vsel %vm470_vm5, %v4061_v57, 0.0 }
0x157f   : > { %v4067_v58 = vpop.eup %3497  ;;  %1705 = vadd.xlane.f32.xlu0 %v1704_v54  ;;  %v1698_v31 = vsel %vm463_vm4, %v4063_v8, 0.0 }
0x1580   : > { %v1872_v30 = vsel %vm470_vm5, %v4067_v58, 0.0 }
0x1581   : > { %1873 = vadd.xlane.f32.xlu1 %v1872_v30 }
0x1583   : > { %1699 = vadd.xlane.f32.xlu0 %v1698_v31 }
0x1585   : > { %v3500_v40 = vpop.eup %3499 }
0x1586   : > { %v3502_v42 = vpop.eup %3501  ;;  %v1869_v43 = vsel %vm463_vm4, %v3500_v40, 0.0 }
0x1587   : > { %v1866_v44 = vsel %vm463_vm4, %v3502_v42, 0.0  ;;  %v3504_v47 = vpop.eup %3503 }
0x1588   : > { %v1701_v48 = vsel %vm463_vm4, %v3504_v47, 0.0 }
0x1592   : > { %1717 = vrot.lane.b32.xlu1 %v4025_v41, %s3620_s7 }
0x1596   : > { %1883 = vrot.lane.b32.xlu1 %v4029_v45, %s3624_s10 }
0x1599   : > { %1715 = vrot.lane.b32.xlu0 %v4029_v45, %s3620_s7  ;;  %s4332_s7 = smov 8  }
0x15b8   : > { %1870 = vadd.xlane.f32.xlu0 %v1869_v43 }
0x15ba   : > { %1867 = vadd.xlane.f32.xlu1 %v1866_v44 }
0x15be   : > { %1702 = vadd.xlane.f32.xlu1 %v1701_v48 }
0x15ce   : > { %1949 = vrot.lane.b32.xlu0 %v4029_v45, %s3625_s11 }
0x15cf   : > { %1885 = vrot.lane.b32.xlu1 %v4025_v41, %s3624_s10 }
0x15d2   : > { %1945 = vrot.lane.b32.xlu0 %v4029_v45, %s3626_s17 }
0x15d3   : > { %1951 = vrot.lane.b32.xlu1 %v4025_v41, %s3625_s11 }
0x15d7   : > { %1947 = vrot.lane.b32.xlu1 %v4025_v41, %s3626_s17 }
0x160c   : > { %v1706_v49 = vpop.xlane.xlu0 %1705 }
0x160d   : > { %3505 = vrcp.f32 %v1706_v49 }
0x160e   : > { %v1874_v50 = vpop.xlane.xlu1 %1873 }
0x1610   : > { %v1700_v52 = vpop.xlane.xlu0 %1699 }
0x1611   : > { %3507 = vrcp.f32 %v1700_v52 }
0x1612   : > { %v1718_v59 = vpop.permute.xlu1 %1717 }
0x1613   : > { %v1727_v61 = vand.u32 %v1718_v59, %v3797_v46 }
0x1614   : > { %v1716_v60 = vpop.permute.xlu0 %1715 }
0x1615   : > { %3185 = vmatprep.subr.bf16.mxu0 %v1716_v60 }
0x1616   : > { %3186 = vmatpush3.bf16.msra.mxu0 %v1716_v60  ;;  %v1884_v17 = vpop.permute.xlu1 %1883 }
0x1617   : > { %3187 = vmatprep.subr.bf16.mxu0 %v1727_v61  ;;  %v3506_v3 = vpop.eup %3505 }
0x1618   : > { %v1712_v6 = vmul.f32 %v3506_v3, %v4061_v57 }
0x161a   : > { %3188 = vmatpush3.bf16.msra.mxu0 %v1727_v61  ;;  %v1714_v15 = vpack.c.bf16 %v1712_v6, %v1712_v6 }
0x161b   : > { %3201 = vmatprep.subr.bf16.mxu0 %v1884_v17  ;;  %v3508_v21 = vpop.eup %3507 }
0x161c   : > { %v1710_v7 = vmul.f32 %v3508_v21, %v4063_v8 }
0x1645   : > { %v1871_v1 = vpop.xlane.xlu0 %1870 }
0x1647   : > { %v1868_v62 = vpop.xlane.xlu1 %1867 }
0x1648   : > { %3509 = vrcp.f32 %v1868_v62 }
0x1649   : > { %3511 = vrcp.f32 %v1871_v1  ;;  %v1950_v24 = vpop.permute.xlu0 %1949 }
0x164a   : > { %v1960_v26 = vsel %vm399_vm3, %v1950_v24, 0 }
0x164b   : > { %v1703_v20 = vpop.xlane.xlu1 %1702 }
0x164c   : > { %3513 = vrcp.f32 %v1703_v20 }
0x164d   : > { %3515 = vrcp.f32 %v1874_v50  ;;  %v1946_v25 = vpop.permute.xlu0 %1945 }
0x164f   : > { %v1886_v10 = vpop.permute.xlu1 %1885 }
0x1650   : > { %v1895_v22 = vand.u32 %v1886_v10, %v3797_v46 }
0x1652   : > { %v3510_v2 = vpop.eup %3509 }
0x1653   : > { %v3512_v5 = vpop.eup %3511  ;;  %v1878_v9 = vmul.f32 %v3510_v2, %v3502_v42  ;;  %v1952_v11 = vpop.permute.xlu1 %1951 }
0x1654   : > { %v1879_v13 = vmul.f32 %v3512_v5, %v3500_v40  ;;  %v1963_v27 = vsel %vm399_vm3, %v1952_v11, 0 }
0x1656   : > { %v3514_v0 = vpop.eup %3513  ;;  %v1881_v19 = vpack.c.bf16 %v1879_v13, %v1878_v9 }
0x1657   : > { %v1711_v63 = vmul.f32 %v3514_v0, %v3504_v47  ;;  %v3516_v16 = vpop.eup %3515  ;;  %v1948_v18 = vpop.permute.xlu1 %1947 }
0x1658   : > { %v1880_v23 = vmul.f32 %v3516_v16, %v4067_v58 }
0x1659   : > { %v1713_v12 = vpack.c.bf16 %v1711_v63, %v1710_v7 }
0x165a   : > { %v1882_v14 = vpack.c.bf16 %v1880_v23, %v1880_v23 }
0x165b   : > { %3189 = vmatprep.mubr.msk.bf16.mxu0 %vm463_vm4, %v1713_v12 }
0x165c   : > { %3190 = vmatmul.mubr.msk.bf16.vlgmr.msra.gmra.mrb[28].mxu0 %vm463_vm4, %v1714_v15 }
0x165d   : > { %3202 = vmatpush3.bf16.msra.mxu0 %v1884_v17  ;;  %3205 = vmatprep.mubr.msk.bf16.mxu0 %vm463_vm4, %v1881_v19 }
0x165e   : > { %3203 = vmatprep.subr.bf16.mxu0 %v1895_v22 }
0x1661   : > { %3204 = vmatpush3.bf16.msra.mxu0 %v1895_v22 }
0x1662   : > { %3297 = vmatprep.subr.msk.bf16.mxu0 %vm399_vm3, %v1950_v24 }
0x1664   : > { %3206 = vmatmul.mubr.msk.bf16.vlgmr.msra.gmra.mrb[32].mxu0 %vm463_vm4, %v1882_v14 }
0x1665   : > { %3213 = vmatprep.mubr.msk.bf16.mxu0 %vm399_vm3, %v1946_v25 }
0x166a   : > { %3210 = vmatpush3.bf16.xpose.msra.mxu0 %v1960_v26 }
0x166b   : > { %3298 = vmatprep.subr.msk.bf16.mxu0 %vm399_vm3, %v1952_v11 }
0x1672   : > { %3212 = vmatpush3.bf16.xpose.msra.mxu0 %v1963_v27 }
0x1679   : > { %3214 = vmatmul.mubr.msk.bf16.vlgmr.msra.gmra.mrb[36].mxu0 %vm399_vm3, %v1948_v18 }
0x172f   : > { %v4107_v4 = vpop.f32.mrb[28].mxu0 }
0x1730   : > { %v4109_v28 = vpop.f32.mrb[29].mxu0 }
0x1731   : > { %v3192_v29 = vpop.f32.mrb[30].mxu0 }
0x1732   : > { %v4111_v55 = vpop.f32.mrb[31].mxu0 }
0x1737   : > { %v4113_v57 = vpop.f32.mrb[32].mxu0 }
0x1738   : > { %v4115_v8 = vpop.f32.mrb[33].mxu0 }
0x1739   : > { %v3208_v54 = vpop.f32.mrb[34].mxu0 }
0x173a   : > { %v4117_v58 = vpop.f32.mrb[35].mxu0 }
0x173b   : > { %v3373_v30 = vpack.i.bf16 %v4117_v58, %v4115_v8 }
0x174c   : > { %v3215_v31 = vpop.f32.mrb[36].mxu0 }
0x174d   : > { %v1999_v32 = vpop.f32.mrb[37].mxu0  ;;  %v2015_v36 = vmul.f32 0.35355338, %v3215_v31 }
0x174e   : > { %v2013_v33 = vmul.f32 0.35355338, %v1999_v32  ;;  %v3216_v34 = vpop.f32.mrb[38].mxu0 }
0x174f   : > { %v2002_v35 = vpop.f32.mrb[39].mxu0  ;;  %v2022_v40 = vsel %vm470_vm5, %v2015_v36, -inf }
0x1750   : > { %v2014_v37 = vmul.f32 0.35355338, %v2002_v35  ;;  %v2016_v38 = vsel %vm463_vm4, %v2013_v33, -inf }
0x1751   : > { %2017 = vmax.xlane.f32.xlu0 %v2016_v38 }
0x1752   : > { %v2019_v39 = vsel %vm463_vm4, %v2014_v37, -inf }
0x1753   : > { %2020 = vmax.xlane.f32.xlu1 %v2019_v39 }
0x1755   : > { %2023 = vmax.xlane.f32.xlu0 %v2022_v40 }
0x17de   : > { %v2018_v42 = vpop.xlane.xlu0 %2017 }
0x17df   : > { %v2025_v43 = vsub.f32 %v2013_v33, %v2018_v42 }
0x17e0   : > { %v2021_v44 = vpop.xlane.xlu1 %2020 }
0x17e1   : > { %v2028_v47 = vmul.f32 1.442695, %v2025_v43  ;;  %v2026_v48 = vsub.f32 %v2014_v37, %v2021_v44 }
0x17e2   : > { %v2024_v49 = vpop.xlane.xlu0 %2023 }
0x17e3   : > { %3517 = vpow2.f32 %v2028_v47  ;;  %v2030_v50 = vmul.f32 1.442695, %v2026_v48  ;;  %v2027_v52 = vsub.f32 %v2015_v36, %v2024_v49 }
0x17e5   : > { %3519 = vpow2.f32 %v2030_v50  ;;  %v2032_v59 = vmul.f32 1.442695, %v2027_v52 }
0x17e7   : > { %3521 = vpow2.f32 %v2032_v59 }
0x17ed   : > { %v3518_v60 = vpop.eup %3517 }
0x17ee   : > { %v2034_v61 = vsel %vm463_vm4, %v3518_v60, 0.0 }
0x17ef   : > { %v3520_v17 = vpop.eup %3519  ;;  %2035 = vadd.xlane.f32.xlu0 %v2034_v61 }
0x17f0   : > { %v2037_v20 = vsel %vm463_vm4, %v3520_v17, 0.0 }
0x17f1   : > { %v3522_v62 = vpop.eup %3521 }
0x17f2   : > { %v2040_v1 = vsel %vm470_vm5, %v3522_v62, 0.0 }
0x17f3   : > { %2041 = vadd.xlane.f32.xlu1 %v2040_v1  ;;  %2038 = vadd.xlane.f32.xlu0 %v2037_v20 }
0x1804   : > { %2053 = vrot.lane.b32.xlu1 %v4025_v41, %s3627_s19 }
0x1808   : > { %2117 = vrot.lane.b32.xlu1 %v4029_v45, %s3628_s20 }
0x1809   : > { %2051 = vrot.lane.b32.xlu0 %v4029_v45, %s3627_s19  ;;  %s4334_s19 = smov 24  }
0x180c   : > { %2119 = vrot.lane.b32.xlu1 %v4025_v41, %s3628_s20 }
0x180d   : > { %2113 = vrot.lane.b32.xlu0 %v4029_v45, %s3629_s24 }
0x1810   : > { %2115 = vrot.lane.b32.xlu1 %v4025_v41, %s3629_s24 }
0x187c   : > { %v2036_v3 = vpop.xlane.xlu0 %2035 }
0x187d   : > { %3523 = vrcp.f32 %v2036_v3 }
0x1880   : > { %v2039_v21 = vpop.xlane.xlu0 %2038  ;;  %v2042_v2 = vpop.xlane.xlu1 %2041 }
0x1881   : > { %3525 = vrcp.f32 %v2039_v21 }
0x1882   : > { %3527 = vrcp.f32 %v2042_v2 }
0x1884   : > { %v2052_v5 = vpop.permute.xlu0 %2051  ;;  %v2054_v0 = vpop.permute.xlu1 %2053 }
0x1885   : > { %v2063_v6 = vand.u32 %v2054_v0, %v3797_v46  ;;  %3217 = vmatprep.subr.bf16.mxu1 %v2052_v5 }
0x1886   : > { %3218 = vmatpush3.bf16.msra.mxu1 %v2052_v5 }
0x1887   : > { %3219 = vmatprep.subr.bf16.mxu1 %v2063_v6  ;;  %v3524_v7 = vpop.eup %3523 }
0x1888   : > { %v2118_v63 = vpop.permute.xlu1 %2117  ;;  %v2046_v12 = vmul.f32 %v3524_v7, %v3518_v60  ;;  %v2114_v22 = vpop.permute.xlu0 %2113 }
0x1889   : > { %v2128_v23 = vsel %vm399_vm3, %v2118_v63, 0 }
0x188a   : > { %3220 = vmatpush3.bf16.msra.mxu1 %v2063_v6 }
0x188b   : > { %v3526_v9 = vpop.eup %3525  ;;  %3299 = vmatprep.subr.msk.bf16.mxu1 %vm399_vm3, %v2118_v63  ;;  %v3408_v63 = vld [vmem:[%s4318_s1 + $0xa0] sm:$0xff]  }
0x188c   : > { %v3528_v10 = vpop.eup %3527  ;;  %v2047_v13 = vmul.f32 %v3526_v9, %v3520_v17  ;;  %v2120_v24 = vpop.permute.xlu1 %2119 }
0x188d   : > { %v2048_v15 = vmul.f32 %v3528_v10, %v3522_v62  ;;  %v2131_v14 = vsel %vm399_vm3, %v2120_v24, 0 }
0x188e   : > { %v2049_v16 = vpack.c.bf16 %v2047_v13, %v2046_v12 }
0x188f   : > { %v2050_v19 = vpack.c.bf16 %v2048_v15, %v2048_v15 }
0x1890   : > { %3221 = vmatprep.mubr.msk.bf16.mxu1 %vm463_vm4, %v2049_v16  ;;  %v2116_v25 = vpop.permute.xlu1 %2115 }
0x1891   : > { %3222 = vmatmul.mubr.msk.bf16.vlgmr.msra.gmra.mrb[36].mxu1 %vm463_vm4, %v2050_v19 }
0x1892   : > { %3229 = vmatprep.mubr.msk.bf16.mxu1 %vm399_vm3, %v2114_v22 }
0x1893   : > { %3226 = vmatpush3.bf16.xpose.msra.mxu1 %v2128_v23 }
0x1894   : > { %3300 = vmatprep.subr.msk.bf16.mxu1 %vm399_vm3, %v2120_v24 }
0x189b   : > { %3228 = vmatpush3.bf16.xpose.msra.mxu1 %v2131_v14 }
0x18a2   : > { %3230 = vmatmul.mubr.msk.bf16.vlgmr.msra.gmra.mrb[40].mxu1 %vm399_vm3, %v2116_v25 }
0x1964   : > { %v3223_v26 = vpop.f32.mrb[36].mxu1 }
0x1965   : > { %v2099_v11 = vpop.f32.mrb[37].mxu1 }
0x1966   : > { %v3224_v27 = vpop.f32.mrb[38].mxu1 }
0x1967   : > { %v2102_v18 = vpop.f32.mrb[39].mxu1 }
0x1968   : > { %v3378_v29 = vpack.i.bf16 %v2102_v18, %v2099_v11 }
0x1975   : > { %v3231_v54 = vpop.f32.mrb[40].mxu1 }
0x1976   : > { %v2167_v31 = vpop.f32.mrb[41].mxu1  ;;  %v2183_v35 = vmul.f32 0.35355338, %v3231_v54 }
0x1977   : > { %v2181_v32 = vmul.f32 0.35355338, %v2167_v31  ;;  %v3232_v33 = vpop.f32.mrb[42].mxu1 }
0x1978   : > { %v2170_v34 = vpop.f32.mrb[43].mxu1  ;;  %v2190_v39 = vsel %vm470_vm5, %v2183_v35, -inf }
0x1979   : > { %v2182_v36 = vmul.f32 0.35355338, %v2170_v34  ;;  %v2184_v37 = vsel %vm463_vm4, %v2181_v32, -inf }
0x197a   : > { %2185 = vmax.xlane.f32.xlu0 %v2184_v37 }
0x197b   : > { %v2187_v38 = vsel %vm463_vm4, %v2182_v36, -inf }
0x197c   : > { %2188 = vmax.xlane.f32.xlu1 %v2187_v38 }
0x197e   : > { %2191 = vmax.xlane.f32.xlu0 %v2190_v39 }
0x1a07   : > { %v2186_v40 = vpop.xlane.xlu0 %2185 }
0x1a08   : > { %v2193_v42 = vsub.f32 %v2181_v32, %v2186_v40 }
0x1a09   : > { %v2189_v43 = vpop.xlane.xlu1 %2188 }
0x1a0a   : > { %v2196_v44 = vmul.f32 1.442695, %v2193_v42  ;;  %v2194_v47 = vsub.f32 %v2182_v36, %v2189_v43 }
0x1a0b   : > { %v2192_v48 = vpop.xlane.xlu0 %2191 }
0x1a0c   : > { %3529 = vpow2.f32 %v2196_v44  ;;  %v2198_v49 = vmul.f32 1.442695, %v2194_v47  ;;  %v2195_v50 = vsub.f32 %v2183_v35, %v2192_v48 }
0x1a0e   : > { %3531 = vpow2.f32 %v2198_v49  ;;  %v2200_v52 = vmul.f32 1.442695, %v2195_v50 }
0x1a10   : > { %3533 = vpow2.f32 %v2200_v52 }
0x1a16   : > { %v3530_v59 = vpop.eup %3529 }
0x1a17   : > { %v2202_v60 = vsel %vm463_vm4, %v3530_v59, 0.0 }
0x1a18   : > { %v3532_v61 = vpop.eup %3531  ;;  %2203 = vadd.xlane.f32.xlu0 %v2202_v60 }
0x1a19   : > { %v2205_v1 = vsel %vm463_vm4, %v3532_v61, 0.0 }
0x1a1a   : > { %v3534_v17 = vpop.eup %3533 }
0x1a1b   : > { %v2208_v62 = vsel %vm470_vm5, %v3534_v17, 0.0 }
0x1a1c   : > { %2209 = vadd.xlane.f32.xlu1 %v2208_v62  ;;  %2206 = vadd.xlane.f32.xlu0 %v2205_v1 }
0x1a2d   : > { %2221 = vrot.lane.b32.xlu1 %v4025_v41, %s4331_s6 }
0x1a31   : > { %3374 = vrot.lane.b32.xlu1 %v3373_v30, %s4332_s7 }
0x1a32   : > { %2219 = vrot.lane.b32.xlu0 %v4029_v45, %s4331_s6  ;;  %s4275_s6 = scalar_lea.hbm %s4320_s3, %s2932_s4 }
0x1a35   : > { %2288 = vrot.lane.b32.xlu1 %v4113_v57, %s4332_s7  ;;  %s3555_s7 = scalar_lea.vmem %s4277_s28, 16 }
0x1a36   : > { %3379 = vrot.lane.b32.xlu0 %v3378_v29, %s4333_s8  ;;  %p3556_p11 = scmp.ne.s32.totalorder %s4277_s28, %s3555_s7 }
0x1a38   : > { %p3557_p12 = pnand %p3556_p11, %p3695_p5 }
0x1a39   : > { %2300 = vrot.lane.b32.xlu1 %v3223_v26, %s4333_s8  ;;  %s3636_s8 = smov [#allocation2]  }
0x1a3a   : > { %p3558_p13 = pneg %p3557_p12  ;;  %s3559_s9 = sshll.u32 %s3636_s8, 4  ;;  %s3560_s9 = int_to_ptr.vmem [resolvable:$false] %s3559_s9 }
0x1a3b   : > { %s3561_s10 = scalar_lea.vmem %s3560_s9, 32  ;;  %p3562_p0 = scmp.lt.s32.totalorder %s4277_s28, %s3560_s9 }
0x1a3c   : > { %p3563_p1 = scmp.lt.s32.totalorder %s3561_s10, %s3555_s7 }
0x1a3e   : > { %p3564_p2 = por %p3563_p1, %p3562_p0 }
0x1a40   : > { %p3565_p3 = pnand %p3564_p2, %p3558_p13 }
0x1aa5   : > { %v2204_v20 = vpop.xlane.xlu0 %2203 }
0x1aa6   : > { %3535 = vrcp.f32 %v2204_v20 }
0x1aa9   : > { %v2207_v3 = vpop.xlane.xlu0 %2206  ;;  %v2210_v21 = vpop.xlane.xlu1 %2209 }
0x1aaa   : > { %3537 = vrcp.f32 %v2207_v3 }
0x1aab   : > { %3539 = vrcp.f32 %v2210_v21 }
0x1aad   : > { %v2220_v41 = vpop.permute.xlu0 %2219  ;;  %v2222_v2 = vpop.permute.xlu1 %2221 }
0x1aae   : > { %v2231_v8 = vand.u32 %v2222_v2, %v3797_v46  ;;  %3233 = vmatprep.subr.bf16.mxu0 %v2220_v41  ;;  %v3407_v46 = vld [vmem:[%s4318_s1 + $0x98] sm:$0xff]  }
0x1aaf   : > { %3234 = vmatpush3.bf16.msra.mxu0 %v2220_v41 }
0x1ab0   : > { %3235 = vmatprep.subr.bf16.mxu0 %v2231_v8  ;;  %v3536_v45 = vpop.eup %3535 }
0x1ab1   : > { %v2214_v30 = vmul.f32 %v3536_v45, %v3530_v59  ;;  %v3375_v16 = vpop.permute.xlu1 %3374  ;;  %v3380_v22 = vpop.permute.xlu0 %3379 }
0x1ab2   : > { %v3377_v23 = vunpack.i.h.bf16 %v3375_v16  ;;  %v3376_v24 = vunpack.i.l.bf16 %v3375_v16  ;;  %v3382_v25 = vunpack.i.h.bf16 %v3380_v22  ;;  %v3381_v26 = vunpack.i.l.bf16 %v3380_v22 }
0x1ab3   : > { %3236 = vmatpush3.bf16.msra.mxu0 %v2231_v8 }
0x1ab4   : > { %v3538_v57 = vpop.eup %3537  ;;  %3241 = vmatprep.subr.bf16.mxu0 %v3407_v46  ;;  %v2318_v11 = vsel %vm399_vm3, %v4111_v55, %v3377_v23  ;;  %v2317_v27 = vsel %vm399_vm3, %v4109_v28, %v3376_v24 }
0x1ab5   : > { %v3540_v58 = vpop.eup %3539  ;;  %v2215_v5 = vmul.f32 %v3538_v57, %v3532_v61  ;;  %v2289_v19 = vpop.permute.xlu1 %2288  ;;  %v2320_v35 = vsel %vm1108_vm7, %v2317_v27, %v3381_v26  ;;  %v2321_v36 = vsel %vm1108_vm7, %v2318_v11, %v3382_v25  ;;  %v2914_v26 = vld [vmem:[%s4319_s2 + $0x80] ss:$0 sm:$0xff] }
0x1ab6   : > { %v2216_v0 = vmul.f32 %v3540_v58, %v3534_v17  ;;  %v2319_v29 = vsel %vm399_vm3, %v4107_v4, %v2289_v19  ;;  %v2908_v4 = vld [vmem:[%s4319_s2 + $0x70] ss:$0 sm:$0xff]  ;;  %v2913_v19 = vld [vmem:[%s4319_s2 + $0x78] ss:$0 sm:$0xff] }
0x1ab7   : > { %v2217_v6 = vpack.c.bf16 %v2215_v5, %v2214_v30  ;;  %v3409_v30 = vld [vmem:[%s4318_s1 + $0xa8] sm:$0xff]   ;;  %v3410_v5 = vld [vmem:[%s4318_s1 + $0xb0] sm:$0xff]  }
0x1ab8   : > { %v2218_v7 = vpack.c.bf16 %v2216_v0, %v2216_v0  ;;  %3249 = vmatprep.subr.bf16.mxu1 %v3409_v30 }
0x1ab9   : > { %3237 = vmatprep.mubr.msk.bf16.mxu0 %vm463_vm4, %v2217_v6  ;;  %v2301_v14 = vpop.permute.xlu1 %2300  ;;  %3250 = vmatpush3.bf16.msra.mxu1 %v3409_v30 }
0x1aba   : > { %3238 = vmatmul.mubr.msk.bf16.vlgmr.msra.gmra.mrb[40].mxu0 %vm463_vm4, %v2218_v7  ;;  %v2322_v31 = vsel %vm1108_vm7, %v2319_v29, %v2301_v14  ;;  %3251 = vmatprep.subr.bf16.mxu1 %v3410_v5 }
0x1abb   : > { %3242 = vmatpush3.bf16.msra.mxu0 %v3407_v46 }
0x1abc   : > { %3243 = vmatprep.subr.bf16.mxu0 %v3408_v63 }
0x1abd   : > { %3252 = vmatpush3.bf16.msra.mxu1 %v3410_v5 }
0x1abf   : > { %3244 = vmatpush3.bf16.msra.mxu0 %v3408_v63 }
0x1b8d   : > { %v3239_v9 = vpop.f32.mrb[40].mxu0 }
0x1b8e   : > { %2312 = vrot.lane.b32.xlu1 %v3239_v9, %s4334_s19  ;;  %v2267_v10 = vpop.f32.mrb[41].mxu0 }
0x1b8f   : > { %v3240_v12 = vpop.f32.mrb[42].mxu0 }
0x1b90   : > { %v2270_v13 = vpop.f32.mrb[43].mxu0 }
0x1b91   : > { %v3383_v15 = vpack.i.bf16 %v2270_v13, %v2267_v10 }
0x1b93   : > { %3384 = vrot.lane.b32.xlu0 %v3383_v15, %s4334_s19 }
0x1c00   : > { %v2313_v18 = vpop.permute.xlu1 %2312 }
0x1c01   : > { %v2325_v34 = vsel %vm1112_vm8, %v2322_v31, %v2313_v18 }
0x1c02   : > { %v2327_v38 = vpack.c.bf16 %v2325_v34, %v2325_v34  ;;  %v3412_v34 = vld [vmem:[%s4318_s1 + $0xc0] sm:$0xff]  }
0x1c05   : > { %v3385_v54 = vpop.permute.xlu0 %3384 }
0x1c06   : > { %v3387_v32 = vunpack.i.h.bf16 %v3385_v54  ;;  %v3386_v33 = vunpack.i.l.bf16 %v3385_v54 }
0x1c08   : > { %v2323_v55 = vsel %vm1112_vm8, %v2320_v35, %v3386_v33  ;;  %v2324_v37 = vsel %vm1112_vm8, %v2321_v36, %v3387_v32  ;;  %v3411_v33 = vld [vmem:[%s4318_s1 + $0xb8] sm:$0xff]   ;;  %v3413_v35 = vld [vmem:[%s4318_s1 + $0xc8] sm:$0xff]   ;;  %v3414_v36 = vld [vmem:[%s4318_s1 + $0xd0] sm:$0xff]  }
0x1c09   : > { %v2326_v28 = vpack.c.bf16 %v2324_v37, %v2323_v55  ;;  %3257 = vmatprep.subr.bf16.mxu0 %v3411_v33  ;;  %v3415_v55 = vld [vmem:[%s4318_s1 + $0xd8] sm:$0xff]   ;;  %v3416_v37 = vld [vmem:[%s4318_s1 + $0xe0] sm:$0xff]  }
0x1c0b   : > { %3245 = vmatprep.mubr.msk.bf16.mxu0 %vm258_vm2, %v2326_v28  ;;  %v3417_v28 = vld [vmem:[%s4318_s1 + $0xe8] sm:$0xff]  }
0x1c0c   : > { %3246 = vmatmul.mubr.msk.bf16.vlgmr.msra.gmra.mrb[44].mxu0 %vm258_vm2, %v2327_v38  ;;  %v3418_v38 = vld [vmem:[%s4318_s1 + $0xf0] sm:$0xff]  }
0x1c0d   : > { %3258 = vmatpush3.bf16.msra.mxu0 %v3411_v33 }
0x1c0e   : > { %3259 = vmatprep.subr.bf16.mxu0 %v3412_v34 }
0x1c11   : > { %3260 = vmatpush3.bf16.msra.mxu0 %v3412_v34  ;;  %v2683_v34 = vld [vmem:[%s4319_s2 + $0x98] sm:$0x1] }
0x1c12   : > { %3261 = vmatprep.subr.bf16.mxu0 %v3413_v35 }
0x1c15   : > { %3262 = vmatpush3.bf16.msra.mxu0 %v3413_v35 }
0x1c16   : > { %3263 = vmatprep.subr.bf16.mxu0 %v3414_v36 }
0x1c19   : > { %3264 = vmatpush3.bf16.msra.mxu0 %v3414_v36  ;;  %v2684_v36 = vld [vmem:[%s4319_s2 + $0xa0] sm:$0x1] }
0x1c1a   : > { %3265 = vmatprep.subr.bf16.mxu0 %v3415_v55 }
0x1c1d   : > { %3266 = vmatpush3.bf16.msra.mxu0 %v3415_v55 }
0x1c1e   : > { %3267 = vmatprep.subr.bf16.mxu0 %v3416_v37 }
0x1c21   : > { %3268 = vmatpush3.bf16.msra.mxu0 %v3416_v37 }
0x1c22   : > { %3269 = vmatprep.subr.bf16.mxu0 %v3417_v28 }
0x1c25   : > { %3270 = vmatpush3.bf16.msra.mxu0 %v3417_v28 }
0x1c26   : > { %3271 = vmatprep.subr.bf16.mxu0 %v3418_v38 }
0x1c29   : > { %3272 = vmatpush3.bf16.msra.mxu0 %v3418_v38  ;;  %v2705_v38 = vld [vmem:[%s4319_s2 + $0xa8] sm:$0x1] }
0x1cdf   : > { %v3247_v39 = vpop.f32.mrb[44].mxu0 }
0x1ce0   : > { %v2389_v40 = vpop.f32.mrb[45].mxu0  ;;  %v2398_v42 = vadd.f32 %v3247_v39, %v2908_v4 }
0x1ce1   : > { %v2390_v43 = vadd.f32 %v2908_v4, %v2389_v40  ;;  %v3248_v44 = vpop.f32.mrb[46].mxu0 }
0x1ce2   : > { %v2392_v47 = vpop.f32.mrb[47].mxu0  ;;  %v2405_v50 = vadd.f32 %v2398_v42, %v3991_v53 }
0x1ce3   : > { %v4195_v48 = vadd.f32 %v2390_v43, %v3988_v51  ;;  %v2393_v49 = vadd.f32 %v2908_v4, %v2392_v47  ;;  %v2915_v4 = vld [vmem:[%s4319_s2 + $0x88] ss:$0 sm:$0xff] }
0x1ce4   : > { %v2414_v61 = vsel %vm265_vm1, %v2405_v50, 0.0 }
0x1ce5   : > { %v2404_v52 = vadd.f32 %v2393_v49, %v3994_v56  ;;  %v2408_v59 = vsel %vm258_vm2, %v4195_v48, 0.0 }
0x1ce6   : > { %2409 = vadd.xlane.f32.xlu0 %v2408_v59 }
0x1ce7   : > { %v2411_v60 = vsel %vm258_vm2, %v2404_v52, 0.0 }
0x1ce8   : > { %2412 = vadd.xlane.f32.xlu1 %v2411_v60 }
0x1cea   : > { %2415 = vadd.xlane.f32.xlu0 %v2414_v61 }
0x1d73   : > { %v2410_v17 = vpop.xlane.xlu0 %2409 }
0x1d74   : > { %v2417_v62 = vmul.f32 0.03125, %v2410_v17 }
0x1d75   : > { %v2413_v1 = vpop.xlane.xlu1 %2412 }
0x1d76   : > { %v2420_v51 = vsub.f32 %v4195_v48, %v2417_v62  ;;  %v2418_v20 = vmul.f32 0.03125, %v2413_v1 }
0x1d77   : > { %v2416_v3 = vpop.xlane.xlu0 %2415 }
0x1d78   : > { %v2421_v53 = vsub.f32 %v2404_v52, %v2418_v20  ;;  %v2419_v21 = vmul.f32 0.03125, %v2416_v3  ;;  %v2423_v56 = vmul.f32 %v2420_v51, %v2420_v51 }
0x1d7a   : > { %v2422_v41 = vsub.f32 %v2405_v50, %v2419_v21  ;;  %v2426_v2 = vsel %vm258_vm2, %v2423_v56, 0.0  ;;  %v2424_v8 = vmul.f32 %v2421_v53, %v2421_v53 }
0x1d7b   : > { %2427 = vadd.xlane.f32.xlu0 %v2426_v2 }
0x1d7c   : > { %v2425_v45 = vmul.f32 %v2422_v41, %v2422_v41  ;;  %v2429_v57 = vsel %vm258_vm2, %v2424_v8, 0.0 }
0x1d7e   : > { %v2432_v58 = vsel %vm265_vm1, %v2425_v45, 0.0 }
0x1d7f   : > { %2430 = vadd.xlane.f32.xlu0 %v2429_v57  ;;  %2433 = vadd.xlane.f32.xlu1 %v2432_v58 }
0x1e08   : > { %v2428_v0 = vpop.xlane.xlu0 %2427 }
0x1e09   : > { %v2435_v6 = vmul.f32 0.03125, %v2428_v0 }
0x1e0b   : > { %v2438_v7 = vadd.f32 1e-12, %v2435_v6 }
0x1e0c   : > { %v2434_v46 = vpop.xlane.xlu1 %2433  ;;  %v2431_v63 = vpop.xlane.xlu0 %2430 }
0x1e0d   : > { %3541 = vrsqrt.f32 %v2438_v7  ;;  %v2437_v9 = vmul.f32 0.03125, %v2434_v46  ;;  %v2436_v10 = vmul.f32 0.03125, %v2431_v63 }
0x1e0f   : > { %v2440_v12 = vadd.f32 1e-12, %v2437_v9  ;;  %v2439_v13 = vadd.f32 1e-12, %v2436_v10 }
0x1e11   : > { %3543 = vrsqrt.f32 %v2440_v12  ;;  %v2920_v12 = vld [vmem:[%s4319_s2 + $0x90] ss:$0 sm:$0xff] }
0x1e12   : > { %3545 = vrsqrt.f32 %v2439_v13 }
0x1e17   : > { %v3542_v15 = vpop.eup %3541 }
0x1e18   : > { %v2444_v16 = vmul.f32 %v3542_v15, %v2420_v51 }
0x1e1a   : > { %v2451_v25 = vmul.f32 %v2913_v19, %v2444_v16 }
0x1e1b   : > { %v3544_v22 = vpop.eup %3543 }
0x1e1c   : > { %v3546_v23 = vpop.eup %3545  ;;  %v2446_v24 = vmul.f32 %v3544_v22, %v2422_v41  ;;  %v2458_v29 = vadd.f32 %v2914_v26, %v2451_v25 }
0x1e1d   : > { %v2445_v14 = vmul.f32 %v3546_v23, %v2421_v53 }
0x1e1e   : > { %v2453_v11 = vmul.f32 %v2913_v19, %v2446_v24 }
0x1e1f   : > { %v2452_v27 = vmul.f32 %v2913_v19, %v2445_v14 }
0x1e20   : > { %v2460_v18 = vadd.f32 %v2914_v26, %v2453_v11 }
0x1e21   : > { %v2459_v54 = vadd.f32 %v2914_v26, %v2452_v27 }
0x1e22   : > { %v2462_v31 = vpack.c.bf16 %v2460_v18, %v2460_v18  ;;  %v3419_v18 = vld [vmem:[%s4318_s1 + $0xf8] sm:$0xff]  }
0x1e23   : > { %v2461_v32 = vpack.c.bf16 %v2459_v54, %v2458_v29  ;;  %v3634_v29 = vmov 0.0  }
0x1e24   : > { %3277 = vmatprep.subr.bf16.mxu1 %v3634_v29 }
0x1e25   : > { %3253 = vmatprep.mubr.msk.bf16.mxu1 %vm258_vm2, %v2461_v32 }
0x1e26   : > { %3254 = vmatmul.mubr.msk.bf16.vlgmr.msra.gmra.mrb[44].mxu1 %vm258_vm2, %v2462_v31 }
0x1e27   : > { %3278 = vmatpush3.bf16.msra.mxu1 %v3419_v18  ;;  %3281 = vmatprep.mubr.msk.bf16.mxu1 %vm3635_vm9, %v3634_v29 }
0x1e28   : > { %3279 = vmatprep.subr.bf16.mxu1 %v3634_v29 }
0x1ef9   : > { %v3255_v39 = vpop.f32.mrb[44].mxu1 }
0x1efa   : > { %v2533_v40 = vadd.f32 %v3255_v39, %v2915_v4  ;;  %v2524_v42 = vpop.f32.mrb[45].mxu1 }
0x1efb   : > { %v2525_v43 = vadd.f32 %v2915_v4, %v2524_v42  ;;  %v3256_v44 = vpop.f32.mrb[46].mxu1 }
0x1efc   : > { %v2540_v47 = vmul.f32 %v2533_v40, %v2533_v40  ;;  %v2527_v49 = vpop.f32.mrb[47].mxu1 }
0x1efd   : > { %v2538_v50 = vmul.f32 %v2525_v43, %v2525_v43  ;;  %v2528_v52 = vadd.f32 %v2915_v4, %v2527_v49 }
0x1efe   : > { %v2543_v59 = vmul.f32 %v2540_v47, %v2533_v40 }
0x1eff   : > { %v2541_v60 = vmul.f32 %v2538_v50, %v2525_v43  ;;  %v2539_v61 = vmul.f32 %v2528_v52, %v2528_v52 }
0x1f00   : > { %v2546_v17 = vmul.f32 0.044715, %v2543_v59 }
0x1f01   : > { %v2544_v62 = vmul.f32 0.044715, %v2541_v60  ;;  %v2542_v1 = vmul.f32 %v2539_v61, %v2528_v52 }
0x1f02   : > { %v2549_v51 = vadd.f32 %v2546_v17, %v2533_v40 }
0x1f03   : > { %v2547_v20 = vadd.f32 %v2544_v62, %v2525_v43  ;;  %v2545_v3 = vmul.f32 0.044715, %v2542_v1 }
0x1f04   : > { %v2552_v53 = vmul.f32 0.7978846, %v2549_v51 }
0x1f05   : > { %v2550_v21 = vmul.f32 0.7978846, %v2547_v20  ;;  %v2548_v56 = vadd.f32 %v2545_v3, %v2528_v52 }
0x1f06   : > { %3547 = vtanh.f32 %v2552_v53 }
0x1f07   : > { %3549 = vtanh.f32 %v2550_v21  ;;  %v2551_v41 = vmul.f32 0.7978846, %v2548_v56 }
0x1f09   : > { %3551 = vtanh.f32 %v2551_v41 }
0x1f10   : > { %v3548_v2 = vpop.eup %3547 }
0x1f11   : > { %v3550_v8 = vpop.eup %3549  ;;  %v2558_v45 = vadd.f32 1.0, %v3548_v2 }
0x1f12   : > { %v2556_v57 = vadd.f32 1.0, %v3550_v8 }
0x1f13   : > { %v3552_v58 = vpop.eup %3551  ;;  %v2561_v30 = vmul.f32 0.5, %v2558_v45 }
0x1f14   : > { %v2557_v5 = vadd.f32 1.0, %v3552_v58  ;;  %v2559_v0 = vmul.f32 0.5, %v2556_v57 }
0x1f15   : > { %v2564_v7 = vmul.f32 %v2561_v30, %v2533_v40 }
0x1f16   : > { %v2560_v6 = vmul.f32 0.5, %v2557_v5  ;;  %v2562_v46 = vmul.f32 %v2559_v0, %v2525_v43 }
0x1f17   : > { %v2566_v10 = vpack.c.bf16 %v2564_v7, %v2564_v7 }
0x1f18   : > { %v2563_v63 = vmul.f32 %v2560_v6, %v2528_v52 }
0x1f1a   : > { %v2565_v9 = vpack.c.bf16 %v2563_v63, %v2562_v46 }
0x1f1c   : > { %3273 = vmatprep.mubr.bf16.mxu0 %v2565_v9 }
0x1f1d   : > { %3274 = vmatmul.mubr.bf16.vlgmr.msra.gmra.mrb[48].mxu0 %v2566_v10 }
0x1ff0   : > { %v3275_v13 = vpop.f32.mrb[48].mxu0 }
0x1ff1   : > { %v2670_v15 = vpop.f32.mrb[49].mxu0 }
0x1ff2   : > { %v2671_v16 = vadd.f32 %v2920_v12, %v2670_v15  ;;  %v3276_v19 = vpop.f32.mrb[50].mxu0 }
0x1ff3   : > { %v2673_v22 = vpop.f32.mrb[51].mxu0 }
0x1ff4   : > { %v2682_v23 = vadd.f32 %v2671_v16, %v4195_v48  ;;  %v3420_v48 = vld [vmem:[%s4318_s1 + $0x100] sm:$0xff]  }
0x1ff5   : > { %3280 = vmatpush3.bf16.msra.mxu1 %v3420_v48 }
0x1ff6   : > { %v2685_v24 = vsel %vm265_vm1, %v2682_v23, 0.0 }
0x1ff7   : > { %2686 = vadd.xlane.f32.xlu0 %v2685_v24 }
0x2084   : > { %v2687_v14 = vpop.xlane.xlu0 %2686 }
0x2085   : > { %v2688_v25 = vmul.f32 0.03125, %v2687_v14 }
0x2087   : > { %v2689_v26 = vsub.f32 %v2682_v23, %v2688_v25 }
0x2089   : > { %v2690_v11 = vmul.f32 %v2689_v26, %v2689_v26 }
0x208b   : > { %v2691_v27 = vsel %vm265_vm1, %v2690_v11, 0.0 }
0x208c   : > { %2692 = vadd.xlane.f32.xlu1 %v2691_v27 }
0x2119   : > { %v2693_v54 = vpop.xlane.xlu1 %2692 }
0x211a   : > { %v2694_v31 = vmul.f32 0.03125, %v2693_v54 }
0x211c   : > { %v2695_v32 = vadd.f32 1e-12, %v2694_v31 }
0x211e   : > { %3553 = vrsqrt.f32 %v2695_v32 }
0x2128   : > { %v3554_v33 = vpop.eup %3553 }
0x2129   : > { %v2697_v35 = vmul.f32 %v3554_v33, %v2689_v26 }
0x212b   : > { %v2698_v55 = vmul.f32 %v2697_v35, %v2683_v34 }
0x212d   : > { %v2699_v37 = vadd.f32 %v2698_v55, %v2684_v36 }
0x212f   : > { %v2700_v28 = vpack.c.bf16 %v2699_v37, %v2699_v37 }
0x2131   : > { %3282 = vmatmul.mubr.msk.bf16.vlgmr.msra.gmra.mrb[48].mxu1 %vm258_vm2, %v2700_v28 }
0x2204   : > { %v2755_v4 = vpop.f32.mrb[48].mxu1 }
0x2205   : > { %v2756_v39 = vadd.f32 %v2755_v4, %v2705_v38  ;;  %v3283_v40 = vpop.f32.mrb[49].mxu1 }
0x2206   : > { %v2758_v42 = vpop.f32.mrb[50].mxu1 }
0x2207   : > { %v3284_v43 = vpop.f32.mrb[51].mxu1  ;;  %2762 = vst.msk [vmem:[%s162_s5] sm:$0x1] %vm2761_vm10, %v2756_v39 }
0x2208   : > { %3568 = shalt.err (!%p3565_p3)
}
0x2209   : > { %s3569_s11 = scalar_lea.hbm %s4275_s6, 16  ;;  %s3573_s20 = scalar_lea.hbm %s4320_s3, 32 }
0x220a   : > { %p3570_p4 = scmp.ne.s32.totalorder %s4275_s6, %s3569_s11  ;;  %p3574_p9 = scmp.lt.u32.totalorder %s4275_s6, %s4320_s3 }
0x220b   : > { %p3575_p10 = scmp.lt.u32.totalorder %s3573_s20, %s3569_s11  ;;  %p3577_p12 = scmp.lt.u32.totalorder %s3569_s11, %s4275_s6 }
0x220c   : > { %p3571_p7 = pnand %p3570_p4, %p3695_p5 }
0x220d   : > { %p3576_p11 = por %p3575_p10, %p3574_p9 }
0x220e   : > { %p3572_p8 = pneg %p3571_p7 }
0x220f   : > { %p3578_p13 = por %p3577_p12, %p3576_p11 }
0x2211   : > { %p3579_p0 = pnand %p3578_p13, %p3572_p8 }
0x2213   : > { %3582 = shalt.err (!%p3579_p0)
}
0x2214   : > { %3302 = dma.vmem_to_hbm [thread:$0]  (%p3695_p5), %s4277_s28, 16, %s4275_s6, %s2764_s16  }
0x2215 PF: > { %p3308_p1 = scmp.ge.s32.totalorder %s3617_s15, 2  ;;  %s2788_s26 = sand.u32 1, %s3605_s12  }
0x2216   : > { %s2789_s30 = scalar_lea.sflag [#allocation3], %s2788_s26 }
0x2217   : > { %p3305_p2 = pnand %p3308_p1, %p3699_p6 }
0x2219   : > { %3600 = dma.done.wait (!%p3305_p2), %s2789_s30, 16  }
0x221a   : > { %3602 = vsyncadd (!%p3305_p2), %s2789_s30, 4294967280  ;;  %p13_p3 = scmp.ge.s32.totalorder %s3682_s18, 4   ;;  %s4335_s12 = smov %s3609_s13 }
0x221b   : > { %s4336_s13 = smov %s3613_s14  ;;  %s4337_s14 = smov %s3693_s21 }
0x221c   : > { %s4338_s15 = smov %s3682_s18  ;;  %15 = sbr.rel (!%p13_p3) target bundleno = 3 (0x3), region = 67 }
0x2223   :  { %2793 = vsyncpa [#allocation3], 1 }
0x2224   :  { %2795 = vsyncpa [#allocation3 + $0x1], 1 }

</bundles_post_ra>
